<compile_context>
chip_gen: v7x
topology: tpu7x:2x2x1
jax: 0.10.0
libtpu: 0.0.40
codegen_flags: <defaults>
</compile_context>

<pallas_src>
import functools

import jax
import jax.numpy as jnp
from jax import lax
from jax.experimental import pallas as pl
from jax.experimental.pallas import tpu as pltpu


_INV_SQRT2 = 0.7071067811865476        # 1/sqrt(2), constant multiply for GELU
_MIB = 1024 * 1024


# ----------------------------------------------------------------------------
# Hardware-aware helpers
# ----------------------------------------------------------------------------
@functools.lru_cache(maxsize=1)
def _vmem_limit_bytes():
    """~75% of physical per-core VMEM, clamped; 48 MiB fallback (safe on all)."""
    cap = None
    try:
        info = pltpu.get_tpu_info()
        cap = getattr(info, "vmem_capacity_bytes", None)
    except Exception:
        cap = None
    if not cap:
        return 48 * _MIB
    return int(min(112 * _MIB, max(32 * _MIB, (int(cap) * 3) // 4)))


def _probe_copy_kernel(x_ref, o_ref):
    o_ref[...] = x_ref[0]


@functools.lru_cache(maxsize=1)
def _single_buffer_ok():
    """True if pipeline_mode=pl.Buffered(1) works for a 3-D constant block."""
    try:
        x = jnp.zeros((2, 8, 128), jnp.float32)
        out = pl.pallas_call(
            _probe_copy_kernel,
            out_shape=jax.ShapeDtypeStruct((16, 128), jnp.float32),
            grid=(2,),
            in_specs=[pl.BlockSpec((2, 8, 128), lambda i: (0, 0, 0),
                                   pipeline_mode=pl.Buffered(1))],
            out_specs=pl.BlockSpec((8, 128), lambda i: (i, 0)),
        )(x)
        jax.block_until_ready(out)
        return True
    except Exception:   # older JAX/Mosaic without single-buffer support
        return False


def _const_spec(shape, *, single_buffer):
    """BlockSpec for a grid-invariant operand (same block every grid step)."""
    zeros = (0,) * len(shape)
    index_map = lambda *_: zeros
    if single_buffer:
        return pl.BlockSpec(shape, index_map, pipeline_mode=pl.Buffered(1))
    return pl.BlockSpec(shape, index_map)


def _round_up(n, m):
    return ((n + m - 1) // m) * m


def _pick_tile_h(h, d, itemsize, vmem_limit):
    """Hidden-dim tile: multiple of 128 dividing H whose streamed w1/w2 tiles
    (double-buffered) fit in ~1/3 of the VMEM budget; else H itself."""
    if h <= 128 or h % 128 != 0:
        return h
    budget = vmem_limit // 3
    t = h
    while t >= 128:
        if h % t == 0 and t % 128 == 0 and 2 * 2 * d * t * itemsize <= budget:
            return t
        t -= 128
    return 128


def _pick_tile_m(m, *, d, tile_h, x_bytes, w_bytes_resident, vmem_limit,
                 max_tile=1024):
    """Row tile for the FF kernel: VMEM-aware (weights + double-buffered
    in/out blocks + f32 intermediates), multiple of 8, <= max_tile."""
    per_row = (2 * 2 * d * x_bytes      # x + out blocks, double-buffered
               + 4 * d                  # f32 accumulator scratch
               + 4 * d                  # f32 LayerNorm temporary
               + 2 * 4 * tile_h)        # f32 hidden intermediate + GELU temp
    budget = vmem_limit - w_bytes_resident - 4 * _MIB   # Mosaic headroom
    cap = max(8, budget // max(per_row, 1))
    tile = min(max_tile, cap, _round_up(m, 8))
    return max(8, (tile // 8) * 8)


def _pick_tile_q(s, max_tile=256):
    """Query-row tile for attention: divisor of S, multiple of 8, <= 256."""
    if s <= max_tile:
        return s
    t = (max_tile // 8) * 8
    while t >= 8:
        if s % t == 0:
            return t
        t -= 8
    return s


# ----------------------------------------------------------------------------
# FeedForward kernel: LayerNorm -> Linear -> GELU -> Linear (+ residual),
# hidden dimension tiled as the last ("arbitrary") grid axis.
# ----------------------------------------------------------------------------
def _ff_kernel(x_ref, g_ref, b_ref, w1_ref, b1_ref, w2_ref, b2_ref,
               o_ref, acc_ref, *, eps, compute_dtype):
    k = pl.program_id(1)
    cdt = compute_dtype

    @pl.when(k == 0)
    def _():
        acc_ref[...] = jnp.zeros_like(acc_ref)

    x = x_ref[...]                       # (tile_m, D), native dtype (resident)
    xf = x.astype(jnp.float32)

    # LayerNorm statistics in f32 (matches nn.LayerNorm(dim)).
    mean = jnp.mean(xf, axis=-1, keepdims=True)
    var = jnp.mean(jnp.square(xf - mean), axis=-1, keepdims=True)
    xn = (xf - mean) * lax.rsqrt(var + eps)
    xn = (xn * g_ref[...].astype(jnp.float32)
          + b_ref[...].astype(jnp.float32)).astype(cdt)

    # Linear(dim -> hidden tile), f32 accumulation on the MXU.
    h = jnp.dot(xn, w1_ref[...].astype(cdt), preferred_element_type=jnp.float32)
    h = h + b1_ref[...].astype(jnp.float32)

    # Exact-erf GELU (torch.nn.GELU default), constant 1/sqrt(2) multiply.
    h = 0.5 * h * (1.0 + lax.erf(h * _INV_SQRT2))

    # Dropout(p=0.0) eval mode is identity.

    # Linear(hidden tile -> dim), accumulate over hidden tiles.
    acc_ref[...] += jnp.dot(h.astype(cdt), w2_ref[...].astype(cdt),
                            preferred_element_type=jnp.float32)

    @pl.when(k == pl.num_programs(1) - 1)
    def _():
        y = acc_ref[...] + b2_ref[...].astype(jnp.float32)
        # Fused residual: Transformer does x = ff(x) + x.
        o_ref[...] = (y + xf).astype(o_ref.dtype)


def feed_forward_block(x, gamma, beta, w1, b1, w2, b2, *, eps=1e-5,
                       compute_dtype=None):
    """Returns FeedForward(x) + x.   x: (B, S, D)."""
    B, S, D = x.shape
    H = w1.shape[1]
    M = B * S
    cdt = jnp.dtype(compute_dtype) if compute_dtype is not None else jnp.dtype(x.dtype)
    vmem_limit = _vmem_limit_bytes()
    single = _single_buffer_ok()

    w_itemsize = jnp.dtype(w1.dtype).itemsize
    tile_h = _pick_tile_h(H, D, w_itemsize, vmem_limit)
    nk = H // tile_h
    if nk == 1:
        # Whole weights resident (single-buffered if supported).
        w_resident = 2 * D * H * w_itemsize * (1 if single else 2)
    else:
        # Streamed (double-buffered) H-tiles of w1 / w2.
        w_resident = 2 * 2 * D * tile_h * w_itemsize

    tile_m = _pick_tile_m(M, d=D, tile_h=tile_h,
                          x_bytes=jnp.dtype(x.dtype).itemsize,
                          w_bytes_resident=w_resident, vmem_limit=vmem_limit)
    m_pad = _round_up(M, tile_m)

    x2 = x.reshape(M, D)
    if m_pad != M:
        x2 = jnp.pad(x2, ((0, m_pad - M), (0, 0)))
    g2, be2 = gamma.reshape(1, D), beta.reshape(1, D)
    b1_2, b2_2 = b1.reshape(1, H), b2.reshape(1, D)

    const = functools.partial(_const_spec, single_buffer=single)
    if nk == 1:
        w1_spec, b1_spec, w2_spec = const((D, H)), const((1, H)), const((H, D))
    else:
        w1_spec = pl.BlockSpec((D, tile_h), lambda i, k: (0, k))
        b1_spec = pl.BlockSpec((1, tile_h), lambda i, k: (0, k))
        w2_spec = pl.BlockSpec((tile_h, D), lambda i, k: (k, 0))

    out2 = pl.pallas_call(
        functools.partial(_ff_kernel, eps=eps, compute_dtype=cdt),
        out_shape=jax.ShapeDtypeStruct((m_pad, D), x.dtype),
        grid_spec=pltpu.PrefetchScalarGridSpec(
            num_scalar_prefetch=0,
            grid=(m_pad // tile_m, nk),
            in_specs=[
                pl.BlockSpec((tile_m, D), lambda i, k: (i, 0)),   # x rows
                const((1, D)),                                    # gamma
                const((1, D)),                                    # beta
                w1_spec,                                          # w1
                b1_spec,                                          # b1
                w2_spec,                                          # w2
                const((1, D)),                                    # b2
            ],
            out_specs=pl.BlockSpec((tile_m, D), lambda i, k: (i, 0)),
            scratch_shapes=[pltpu.VMEM((tile_m, D), jnp.float32)],
        ),
        compiler_params=pltpu.CompilerParams(
            dimension_semantics=("parallel", "arbitrary"),
            vmem_limit_bytes=vmem_limit),
    )(x2, g2, be2, w1, b1_2, w2, b2_2)

    if m_pad != M:
        out2 = out2[:M]
    return out2.reshape(B, S, D)


# ----------------------------------------------------------------------------
# Attention kernel: LayerNorm -> per-head QKV -> softmax(QK^T)V -> out proj
# (+ residual).  Grid = (batch, query tiles); K/V cached in VMEM scratch.
# ----------------------------------------------------------------------------
def _attn_kernel(x_ref, g_ref, b_ref, wq_ref, wk_ref, wv_ref, wo_ref, bo_ref,
                 o_ref, k_scr, v_scr, *, heads, scale, eps, tq, compute_dtype):
    cdt = compute_dtype
    qi = pl.program_id(1)
    D = x_ref.shape[-1]

    gamma = g_ref[...].astype(jnp.float32)
    beta = b_ref[...].astype(jnp.float32)

    def layer_norm(v):
        vf = v.astype(jnp.float32)
        mean = jnp.mean(vf, axis=-1, keepdims=True)
        var = jnp.mean(jnp.square(vf - mean), axis=-1, keepdims=True)
        return (vf - mean) * lax.rsqrt(var + eps) * gamma + beta

    # K / V for the whole sequence: computed once per batch element (qi == 0),
    # kept in VMEM scratch across the query tiles.
    @pl.when(qi == 0)
    def _():
        xn_full = layer_norm(x_ref[...]).astype(cdt)          # (S, D)
        for h in range(heads):                                # static unroll
            k_scr[h] = jnp.dot(xn_full, wk_ref[h].astype(cdt),
                               preferred_element_type=jnp.float32).astype(cdt)
            v_scr[h] = jnp.dot(xn_full, wv_ref[h].astype(cdt),
                               preferred_element_type=jnp.float32).astype(cdt)

    q0 = pl.multiple_of(qi * tq, tq)
    x_rows = x_ref[pl.ds(q0, tq), :]                          # (tq, D)
    xf_q = x_rows.astype(jnp.float32)
    xn_q = layer_norm(x_rows).astype(cdt)

    acc = jnp.zeros((tq, D), jnp.float32)
    contract_last = (((1,), (1,)), ((), ()))                  # no K transpose
    for h in range(heads):                                    # static unroll
        q_h = jnp.dot(xn_q, wq_ref[h].astype(cdt),
                      preferred_element_type=jnp.float32)     # (tq, hd)
        dots = lax.dot_general(q_h.astype(cdt), k_scr[h], contract_last,
                               preferred_element_type=jnp.float32) * scale
        # Numerically-stable softmax in f32.
        dots = dots - jnp.max(dots, axis=-1, keepdims=True)
        p = jnp.exp(dots)
        p = p / jnp.sum(p, axis=-1, keepdims=True)
        # Dropout(p=0.0) on attention weights is identity.
        o_h = jnp.dot(p.astype(cdt), v_scr[h],
                      preferred_element_type=jnp.float32)     # (tq, hd)
        # Per-head contribution of the output projection, accumulated into a
        # single (tq, D) f32 accumulator (no lane slicing / concatenate).
        acc = acc + jnp.dot(o_h.astype(cdt), wo_ref[h].astype(cdt),
                            preferred_element_type=jnp.float32)

    y = acc + bo_ref[...].astype(jnp.float32)
    # Fused residual: Transformer does x = attn(x) + x.
    o_ref[...] = (y + xf_q).astype(o_ref.dtype)


def attention_block(x, gamma, beta, w_qkv, w_out, b_out, *, heads, head_dim,
                    eps=1e-5, compute_dtype=None):
    """Returns Attention(x) + x.   x: (B, S, D)."""
    B, S, D = x.shape
    inner = heads * head_dim
    assert w_qkv.shape == (D, 3 * inner)
    assert w_out.shape == (inner, D)
    cdt = jnp.dtype(compute_dtype) if compute_dtype is not None else jnp.dtype(x.dtype)
    vmem_limit = _vmem_limit_bytes()

    # Per-head weight layout (no in-kernel lane slicing of the fused qkv).
    wq = w_qkv[:, :inner].reshape(D, heads, head_dim).transpose(1, 0, 2)
    wk = w_qkv[:, inner:2 * inner].reshape(D, heads, head_dim).transpose(1, 0, 2)
    wv = w_qkv[:, 2 * inner:].reshape(D, heads, head_dim).transpose(1, 0, 2)
    wo = w_out.reshape(heads, head_dim, D)

    g2, be2 = gamma.reshape(1, D), beta.reshape(1, D)
    bo2 = b_out.reshape(1, D)

    tq = _pick_tile_q(S)
    nq = S // tq

    const = functools.partial(_const_spec, single_buffer=_single_buffer_ok())
    kernel = functools.partial(_attn_kernel, heads=heads,
                               scale=float(head_dim) ** -0.5, eps=eps,
                               tq=tq, compute_dtype=cdt)

    return pl.pallas_call(
        kernel,
        out_shape=jax.ShapeDtypeStruct((B, S, D), x.dtype),
        grid_spec=pltpu.PrefetchScalarGridSpec(
            num_scalar_prefetch=0,
            grid=(B, nq),
            in_specs=[
                pl.BlockSpec((pl.Squeezed(), S, D), lambda b, q: (b, 0, 0)),  # x
                const((1, D)),                                                # gamma
                const((1, D)),                                                # beta
                const((heads, D, head_dim)),                                  # wq
                const((heads, D, head_dim)),                                  # wk
                const((heads, D, head_dim)),                                  # wv
                const((heads, head_dim, D)),                                  # wo
                const((1, D)),                                                # b_out
            ],
            out_specs=pl.BlockSpec((pl.Squeezed(), tq, D),
                                   lambda b, q: (b, q, 0)),
            scratch_shapes=[
                pltpu.VMEM((heads, S, head_dim), cdt),   # K cache
                pltpu.VMEM((heads, S, head_dim), cdt),   # V cache
            ],
        ),
        compiler_params=pltpu.CompilerParams(
            dimension_semantics=("parallel", "arbitrary"),
            vmem_limit_bytes=vmem_limit),
    )(x, g2, be2, wq, wk, wv, wo, bo2)


# ----------------------------------------------------------------------------
# Transformer wrapper
# ----------------------------------------------------------------------------
def transformer_forward(x, layer_params, *, heads, head_dim, eps=1e-5,
                        compute_dtype=None):
    """x: (B, S, D).  layer_params: list of per-layer parameter dicts.
    compute_dtype: MXU operand dtype (e.g. jnp.bfloat16); None -> native."""
    for p in layer_params:
        x = attention_block(x, p["attn_gamma"], p["attn_beta"], p["w_qkv"],
                            p["w_out"], p["b_out"], heads=heads,
                            head_dim=head_dim, eps=eps,
                            compute_dtype=compute_dtype)
        x = feed_forward_block(x, p["ff_gamma"], p["ff_beta"], p["w1"],
                               p["b1"], p["w2"], p["b2"], eps=eps,
                               compute_dtype=compute_dtype)
    return x


def init_transformer_params(key, depth, embed_dim, heads, head_dim, mlp_dim,
                            dtype=jnp.float32):
    inner = heads * head_dim
    params = []
    for _ in range(depth):
        key, k0, k1, k2, k3, k4, k5, k6 = jax.random.split(key, 8)
        params.append(dict(
            attn_gamma=jnp.ones((embed_dim,), dtype),
            attn_beta=jnp.zeros((embed_dim,), dtype),
            w_qkv=(jax.random.normal(k0, (embed_dim, 3 * inner), dtype) * 0.05),
            w_out=(jax.random.normal(k1, (inner, embed_dim), dtype) * 0.05),
            b_out=(jax.random.normal(k2, (embed_dim,), dtype) * 0.05),
            ff_gamma=jnp.ones((embed_dim,), dtype),
            ff_beta=jnp.zeros((embed_dim,), dtype),
            w1=(jax.random.normal(k3, (embed_dim, mlp_dim), dtype) * 0.05),
            b1=(jax.random.normal(k4, (mlp_dim,), dtype) * 0.05),
            w2=(jax.random.normal(k5, (mlp_dim, embed_dim), dtype) * 0.05),
            b2=(jax.random.normal(k6, (embed_dim,), dtype) * 0.05),
        ))
    return params


# ----------------------------------------------------------------------------
# Pure-JAX reference (mirrors the PyTorch module)
# ----------------------------------------------------------------------------
def _reference_transformer(x, params, *, heads, head_dim, eps=1e-5):
    def ln(v, g, b):
        vf = v.astype(jnp.float32)
        m = jnp.mean(vf, axis=-1, keepdims=True)
        var = jnp.mean(jnp.square(vf - m), axis=-1, keepdims=True)
        return ((vf - m) * lax.rsqrt(var + eps)
                * g.astype(jnp.float32) + b.astype(jnp.float32))

    inner = heads * head_dim
    scale = float(head_dim) ** -0.5
    out = x.astype(jnp.float32)
    B, S, _ = x.shape
    for p in params:
        # Attention
        xn = ln(out, p["attn_gamma"], p["attn_beta"])
        qkv = xn @ p["w_qkv"].astype(jnp.float32)
        q, k, v = jnp.split(qkv, 3, axis=-1)
        split = lambda t: t.reshape(B, S, heads, head_dim).transpose(0, 2, 1, 3)
        q, k, v = split(q), split(k), split(v)
        dots = jnp.einsum("bhqd,bhkd->bhqk", q, k) * scale
        attn = jax.nn.softmax(dots, axis=-1)
        o = jnp.einsum("bhqk,bhkd->bhqd", attn, v)
        o = o.transpose(0, 2, 1, 3).reshape(B, S, inner)
        o = o @ p["w_out"].astype(jnp.float32) + p["b_out"].astype(jnp.float32)
        out = o + out
        # FeedForward
        xn = ln(out, p["ff_gamma"], p["ff_beta"])
        h = xn @ p["w1"].astype(jnp.float32) + p["b1"].astype(jnp.float32)
        h = 0.5 * h * (1.0 + lax.erf(h / jnp.sqrt(2.0)))
        y = h @ p["w2"].astype(jnp.float32) + p["b2"].astype(jnp.float32)
        out = y + out
    return out.astype(x.dtype)


if __name__ == "__main__":
    # Small shapes consistent with the Transformer module.
    B, S = 2, 8
    EMBED_DIM, DEPTH, HEADS, DIM_HEAD, MLP_DIM = 32, 2, 4, 16, 64

    key = jax.random.PRNGKey(0)
    kx, kp = jax.random.split(key)
    x = jax.random.normal(kx, (B, S, EMBED_DIM), dtype=jnp.float32)
    params = init_transformer_params(kp, DEPTH, EMBED_DIM, HEADS, DIM_HEAD,
                                     MLP_DIM)

    ref = _reference_transformer(x, params, heads=HEADS, head_dim=DIM_HEAD)

    # Native (f32) MXU-operand path: tight tolerance.
    out = transformer_forward(x, params, heads=HEADS, head_dim=DIM_HEAD)
    out = jax.block_until_ready(out)
    assert out.shape == (B, S, EMBED_DIM)
    max_err = float(jnp.max(jnp.abs(out.astype(jnp.float32)
                                    - ref.astype(jnp.float32))))
    assert jnp.allclose(out, ref, atol=1e-3, rtol=1e-3), \
        f"f32 mismatch vs reference (max abs err {max_err})"

    # bf16 MXU-operand path (intended speed/accuracy tradeoff): loose check.
    out_bf = transformer_forward(x, params, heads=HEADS, head_dim=DIM_HEAD,
                                 compute_dtype=jnp.bfloat16)
    out_bf = jax.block_until_ready(out_bf)
    err_bf = float(jnp.max(jnp.abs(out_bf.astype(jnp.float32)
                                   - ref.astype(jnp.float32))))
    assert jnp.isfinite(err_bf) and err_bf < 3e-2, \
        f"bf16 mismatch vs reference (max abs err {err_bf})"

    print("KERNEL_OK")
</pallas_src>

<mosaic_0001>
module attributes {stable_mosaic.version = 11 : i64} {
  func.func @_probe_copy_kernel(%arg0: i32, %arg1: memref<2x8x128xf32, #tpu.memory_space<vmem>>, %arg2: memref<8x128xf32, #tpu.memory_space<vmem>>) attributes {dimension_semantics = [#tpu.dimension_semantics<arbitrary>], iteration_bounds = array<i64: 2>, scalar_prefetch = 0 : i64, scratch_operands = 0 : i64, tpu.core_type = #tpu.core_type<tc>, window_params = [{pipeline_mode = #tpu.pipeline_mode<synchronous>, transform_indices = @transform_0, window_bounds = array<i64: 2, 8, 128>}, {transform_indices = @transform_1, window_bounds = array<i64: 8, 128>}]} {
    %c0 = arith.constant 0 : index
    %c0_0 = arith.constant 0 : index
    %c0_1 = arith.constant 0 : index
    %0 = vector.load %arg1[%c0, %c0_0, %c0_1] : memref<2x8x128xf32, #tpu.memory_space<vmem>>, vector<1x8x128xf32>
    %1 = vector.shape_cast %0 : vector<1x8x128xf32> to vector<8x128xf32>
    %c0_2 = arith.constant 0 : index
    %c0_3 = arith.constant 0 : index
    %2 = vector.load %arg2[%c0_2, %c0_3] : memref<8x128xf32, #tpu.memory_space<vmem>>, vector<8x128xf32>
    tpu.vector_store %arg2[%c0_2, %c0_3], %1 {strides = array<i32>} : memref<8x128xf32, #tpu.memory_space<vmem>>, vector<8x128xf32>,
    return
  }
  func.func @transform_0(%arg0: i32) -> (i32, i32, i32) {
    %c0_i32 = arith.constant 0 : i32
    %c0_i32_0 = arith.constant 0 : i32
    %c0_i32_1 = arith.constant 0 : i32
    %c0_i32_2 = arith.constant 0 : i32
    return %c0_i32, %c0_i32_0, %c0_i32_1 : i32, i32, i32
  }
  func.func @transform_1(%arg0: i32) -> (i32, i32) {
    %c0_i32 = arith.constant 0 : i32
    %c0_i32_0 = arith.constant 0 : i32
    return %arg0, %c0_i32 : i32, i32
  }
}

module attributes {stable_mosaic.version = 11 : i64} {
  func.func @_attn_kernel(%arg0: i32, %arg1: i32, %arg2: memref<1x8x32xf32, #tpu.memory_space<vmem>>, %arg3: memref<1x32xf32, #tpu.memory_space<vmem>>, %arg4: memref<1x32xf32, #tpu.memory_space<vmem>>, %arg5: memref<4x32x16xf32, #tpu.memory_space<vmem>>, %arg6: memref<4x32x16xf32, #tpu.memory_space<vmem>>, %arg7: memref<4x32x16xf32, #tpu.memory_space<vmem>>, %arg8: memref<4x16x32xf32, #tpu.memory_space<vmem>>, %arg9: memref<1x32xf32, #tpu.memory_space<vmem>>, %arg10: memref<1x8x32xf32, #tpu.memory_space<vmem>>, %arg11: memref<4x8x16xf32, #tpu.memory_space<vmem>>, %arg12: memref<4x8x16xf32, #tpu.memory_space<vmem>>) attributes {dimension_semantics = [#tpu.dimension_semantics<parallel>, #tpu.dimension_semantics<arbitrary>], iteration_bounds = array<i64: 2, 1>, scalar_prefetch = 0 : i64, scratch_operands = 2 : i64, tpu.core_type = #tpu.core_type<tc>, window_params = [{transform_indices = @transform_0, window_bounds = array<i64: 1, 8, 32>}, {pipeline_mode = #tpu.pipeline_mode<synchronous>, transform_indices = @transform_1, window_bounds = array<i64: 1, 32>}, {pipeline_mode = #tpu.pipeline_mode<synchronous>, transform_indices = @transform_2, window_bounds = array<i64: 1, 32>}, {pipeline_mode = #tpu.pipeline_mode<synchronous>, transform_indices = @transform_3, window_bounds = array<i64: 4, 32, 16>}, {pipeline_mode = #tpu.pipeline_mode<synchronous>, transform_indices = @transform_4, window_bounds = array<i64: 4, 32, 16>}, {pipeline_mode = #tpu.pipeline_mode<synchronous>, transform_indices = @transform_5, window_bounds = array<i64: 4, 32, 16>}, {pipeline_mode = #tpu.pipeline_mode<synchronous>, transform_indices = @transform_6, window_bounds = array<i64: 4, 16, 32>}, {pipeline_mode = #tpu.pipeline_mode<synchronous>, transform_indices = @transform_7, window_bounds = array<i64: 1, 32>}, {transform_indices = @transform_8, window_bounds = array<i64: 1, 8, 32>}]} {
    %c0 = arith.constant 0 : index
    %c0_0 = arith.constant 0 : index
    %0 = vector.load %arg3[%c0, %c0_0] : memref<1x32xf32, #tpu.memory_space<vmem>>, vector<1x32xf32>
    %c0_1 = arith.constant 0 : index
    %c0_2 = arith.constant 0 : index
    %1 = vector.load %arg4[%c0_1, %c0_2] : memref<1x32xf32, #tpu.memory_space<vmem>>, vector<1x32xf32>
    %c0_i32 = arith.constant 0 : i32
    %2 = arith.cmpi eq, %arg1, %c0_i32 : i32
    %3 = arith.extui %2 : i1 to i32
    %c0_i32_3 = arith.constant 0 : i32
    %4 = arith.cmpi ne, %3, %c0_i32_3 : i32
    scf.if %4 {
      %c0_89 = arith.constant 0 : index
      %c0_90 = arith.constant 0 : index
      %c0_91 = arith.constant 0 : index
      %136 = vector.load %arg2[%c0_89, %c0_90, %c0_91] : memref<1x8x32xf32, #tpu.memory_space<vmem>>, vector<1x8x32xf32>
      %137 = vector.shape_cast %136 : vector<1x8x32xf32> to vector<8x32xf32>
      %cst_92 = arith.constant dense<0.000000e+00> : vector<8xf32>
      %138 = vector.multi_reduction <add>, %137, %cst_92 [1] : vector<8x32xf32> to vector<8xf32>
      %139 = vector.shape_cast %138 : vector<8xf32> to vector<8x1xf32>
      %cst_93 = arith.constant 3.200000e+01 : f32
      %140 = vector.broadcast %cst_93 : f32 to vector<8x1xf32>
      %141 = arith.divf %139, %140 : vector<8x1xf32>
      %142 = vector.broadcast %141 : vector<8x1xf32> to vector<8x32xf32>
      %143 = arith.subf %137, %142 : vector<8x32xf32>
      %144 = arith.mulf %143, %143 : vector<8x32xf32>
      %cst_94 = arith.constant dense<0.000000e+00> : vector<8xf32>
      %145 = vector.multi_reduction <add>, %144, %cst_94 [1] : vector<8x32xf32> to vector<8xf32>
      %146 = vector.shape_cast %145 : vector<8xf32> to vector<8x1xf32>
      %cst_95 = arith.constant 3.200000e+01 : f32
      %147 = vector.broadcast %cst_95 : f32 to vector<8x1xf32>
      %148 = arith.divf %146, %147 : vector<8x1xf32>
      %149 = vector.broadcast %141 : vector<8x1xf32> to vector<8x32xf32>
      %150 = arith.subf %137, %149 : vector<8x32xf32>
      %cst_96 = arith.constant 9.99999974E-6 : f32
      %151 = vector.broadcast %cst_96 : f32 to vector<8x1xf32>
      %152 = arith.addf %148, %151 : vector<8x1xf32>
      %153 = math.rsqrt %152 : vector<8x1xf32>
      %154 = vector.broadcast %153 : vector<8x1xf32> to vector<8x32xf32>
      %155 = arith.mulf %150, %154 : vector<8x32xf32>
      %156 = vector.broadcast %0 : vector<1x32xf32> to vector<8x32xf32>
      %157 = arith.mulf %155, %156 : vector<8x32xf32>
      %158 = vector.broadcast %1 : vector<1x32xf32> to vector<8x32xf32>
      %159 = arith.addf %157, %158 : vector<8x32xf32>
      %c0_97 = arith.constant 0 : index
      %c0_98 = arith.constant 0 : index
      %c0_99 = arith.constant 0 : index
      %160 = vector.load %arg6[%c0_97, %c0_98, %c0_99] : memref<4x32x16xf32, #tpu.memory_space<vmem>>, vector<1x32x16xf32>
      %161 = vector.shape_cast %160 : vector<1x32x16xf32> to vector<32x16xf32>
      %cst_100 = arith.constant dense<0.000000e+00> : vector<8x16xf32>
      %162 = tpu.matmul %159, %161, %cst_100 {dimension_numbers = #tpu.dot_dimension_numbers<[1], [0], [0], [1], [0, 0, 1, 1], [], []>} : vector<8x32xf32>, vector<32x16xf32>, vector<8x16xf32> -> vector<8x16xf32>
      %c0_101 = arith.constant 0 : index
      %c0_102 = arith.constant 0 : index
      %c0_103 = arith.constant 0 : index
      %163 = vector.load %arg11[%c0_101, %c0_102, %c0_103] : memref<4x8x16xf32, #tpu.memory_space<vmem>>, vector<1x8x16xf32>
      %164 = vector.shape_cast %163 : vector<1x8x16xf32> to vector<8x16xf32>
      %165 = vector.shape_cast %162 : vector<8x16xf32> to vector<1x8x16xf32>
      tpu.vector_store %arg11[%c0_101, %c0_102, %c0_103], %165 {strides = array<i32>} : memref<4x8x16xf32, #tpu.memory_space<vmem>>, vector<1x8x16xf32>,
      %c0_104 = arith.constant 0 : index
      %c0_105 = arith.constant 0 : index
      %c0_106 = arith.constant 0 : index
      %166 = vector.load %arg7[%c0_104, %c0_105, %c0_106] : memref<4x32x16xf32, #tpu.memory_space<vmem>>, vector<1x32x16xf32>
      %167 = vector.shape_cast %166 : vector<1x32x16xf32> to vector<32x16xf32>
      %cst_107 = arith.constant dense<0.000000e+00> : vector<8x16xf32>
      %168 = tpu.matmul %159, %167, %cst_107 {dimension_numbers = #tpu.dot_dimension_numbers<[1], [0], [0], [1], [0, 0, 1, 1], [], []>} : vector<8x32xf32>, vector<32x16xf32>, vector<8x16xf32> -> vector<8x16xf32>
      %c0_108 = arith.constant 0 : index
      %c0_109 = arith.constant 0 : index
      %c0_110 = arith.constant 0 : index
      %169 = vector.load %arg12[%c0_108, %c0_109, %c0_110] : memref<4x8x16xf32, #tpu.memory_space<vmem>>, vector<1x8x16xf32>
      %170 = vector.shape_cast %169 : vector<1x8x16xf32> to vector<8x16xf32>
      %171 = vector.shape_cast %168 : vector<8x16xf32> to vector<1x8x16xf32>
      tpu.vector_store %arg12[%c0_108, %c0_109, %c0_110], %171 {strides = array<i32>} : memref<4x8x16xf32, #tpu.memory_space<vmem>>, vector<1x8x16xf32>,
      %c1_111 = arith.constant 1 : index
      %c0_112 = arith.constant 0 : index
      %c0_113 = arith.constant 0 : index
      %172 = vector.load %arg6[%c1_111, %c0_112, %c0_113] : memref<4x32x16xf32, #tpu.memory_space<vmem>>, vector<1x32x16xf32>
      %173 = vector.shape_cast %172 : vector<1x32x16xf32> to vector<32x16xf32>
      %cst_114 = arith.constant dense<0.000000e+00> : vector<8x16xf32>
      %174 = tpu.matmul %159, %173, %cst_114 {dimension_numbers = #tpu.dot_dimension_numbers<[1], [0], [0], [1], [0, 0, 1, 1], [], []>} : vector<8x32xf32>, vector<32x16xf32>, vector<8x16xf32> -> vector<8x16xf32>
      %c1_115 = arith.constant 1 : index
      %c0_116 = arith.constant 0 : index
      %c0_117 = arith.constant 0 : index
      %175 = vector.load %arg11[%c1_115, %c0_116, %c0_117] : memref<4x8x16xf32, #tpu.memory_space<vmem>>, vector<1x8x16xf32>
      %176 = vector.shape_cast %175 : vector<1x8x16xf32> to vector<8x16xf32>
      %177 = vector.shape_cast %174 : vector<8x16xf32> to vector<1x8x16xf32>
      tpu.vector_store %arg11[%c1_115, %c0_116, %c0_117], %177 {strides = array<i32>} : memref<4x8x16xf32, #tpu.memory_space<vmem>>, vector<1x8x16xf32>,
      %c1_118 = arith.constant 1 : index
      %c0_119 = arith.constant 0 : index
      %c0_120 = arith.constant 0 : index
      %178 = vector.load %arg7[%c1_118, %c0_119, %c0_120] : memref<4x32x16xf32, #tpu.memory_space<vmem>>, vector<1x32x16xf32>
      %179 = vector.shape_cast %178 : vector<1x32x16xf32> to vector<32x16xf32>
      %cst_121 = arith.constant dense<0.000000e+00> : vector<8x16xf32>
      %180 = tpu.matmul %159, %179, %cst_121 {dimension_numbers = #tpu.dot_dimension_numbers<[1], [0], [0], [1], [0, 0, 1, 1], [], []>} : vector<8x32xf32>, vector<32x16xf32>, vector<8x16xf32> -> vector<8x16xf32>
      %c1_122 = arith.constant 1 : index
      %c0_123 = arith.constant 0 : index
      %c0_124 = arith.constant 0 : index
      %181 = vector.load %arg12[%c1_122, %c0_123, %c0_124] : memref<4x8x16xf32, #tpu.memory_space<vmem>>, vector<1x8x16xf32>
      %182 = vector.shape_cast %181 : vector<1x8x16xf32> to vector<8x16xf32>
      %183 = vector.shape_cast %180 : vector<8x16xf32> to vector<1x8x16xf32>
      tpu.vector_store %arg12[%c1_122, %c0_123, %c0_124], %183 {strides = array<i32>} : memref<4x8x16xf32, #tpu.memory_space<vmem>>, vector<1x8x16xf32>,
      %c2_125 = arith.constant 2 : index
      %c0_126 = arith.constant 0 : index
      %c0_127 = arith.constant 0 : index
      %184 = vector.load %arg6[%c2_125, %c0_126, %c0_127] : memref<4x32x16xf32, #tpu.memory_space<vmem>>, vector<1x32x16xf32>
      %185 = vector.shape_cast %184 : vector<1x32x16xf32> to vector<32x16xf32>
      %cst_128 = arith.constant dense<0.000000e+00> : vector<8x16xf32>
      %186 = tpu.matmul %159, %185, %cst_128 {dimension_numbers = #tpu.dot_dimension_numbers<[1], [0], [0], [1], [0, 0, 1, 1], [], []>} : vector<8x32xf32>, vector<32x16xf32>, vector<8x16xf32> -> vector<8x16xf32>
      %c2_129 = arith.constant 2 : index
      %c0_130 = arith.constant 0 : index
      %c0_131 = arith.constant 0 : index
      %187 = vector.load %arg11[%c2_129, %c0_130, %c0_131] : memref<4x8x16xf32, #tpu.memory_space<vmem>>, vector<1x8x16xf32>
      %188 = vector.shape_cast %187 : vector<1x8x16xf32> to vector<8x16xf32>
      %189 = vector.shape_cast %186 : vector<8x16xf32> to vector<1x8x16xf32>
      tpu.vector_store %arg11[%c2_129, %c0_130, %c0_131], %189 {strides = array<i32>} : memref<4x8x16xf32, #tpu.memory_space<vmem>>, vector<1x8x16xf32>,
      %c2_132 = arith.constant 2 : index
      %c0_133 = arith.constant 0 : index
      %c0_134 = arith.constant 0 : index
      %190 = vector.load %arg7[%c2_132, %c0_133, %c0_134] : memref<4x32x16xf32, #tpu.memory_space<vmem>>, vector<1x32x16xf32>
      %191 = vector.shape_cast %190 : vector<1x32x16xf32> to vector<32x16xf32>
      %cst_135 = arith.constant dense<0.000000e+00> : vector<8x16xf32>
      %192 = tpu.matmul %159, %191, %cst_135 {dimension_numbers = #tpu.dot_dimension_numbers<[1], [0], [0], [1], [0, 0, 1, 1], [], []>} : vector<8x32xf32>, vector<32x16xf32>, vector<8x16xf32> -> vector<8x16xf32>
      %c2_136 = arith.constant 2 : index
      %c0_137 = arith.constant 0 : index
      %c0_138 = arith.constant 0 : index
      %193 = vector.load %arg12[%c2_136, %c0_137, %c0_138] : memref<4x8x16xf32, #tpu.memory_space<vmem>>, vector<1x8x16xf32>
      %194 = vector.shape_cast %193 : vector<1x8x16xf32> to vector<8x16xf32>
      %195 = vector.shape_cast %192 : vector<8x16xf32> to vector<1x8x16xf32>
      tpu.vector_store %arg12[%c2_136, %c0_137, %c0_138], %195 {strides = array<i32>} : memref<4x8x16xf32, #tpu.memory_space<vmem>>, vector<1x8x16xf32>,
      %c3_139 = arith.constant 3 : index
      %c0_140 = arith.constant 0 : index
      %c0_141 = arith.constant 0 : index
      %196 = vector.load %arg6[%c3_139, %c0_140, %c0_141] : memref<4x32x16xf32, #tpu.memory_space<vmem>>, vector<1x32x16xf32>
      %197 = vector.shape_cast %196 : vector<1x32x16xf32> to vector<32x16xf32>
      %cst_142 = arith.constant dense<0.000000e+00> : vector<8x16xf32>
      %198 = tpu.matmul %159, %197, %cst_142 {dimension_numbers = #tpu.dot_dimension_numbers<[1], [0], [0], [1], [0, 0, 1, 1], [], []>} : vector<8x32xf32>, vector<32x16xf32>, vector<8x16xf32> -> vector<8x16xf32>
      %c3_143 = arith.constant 3 : index
      %c0_144 = arith.constant 0 : index
      %c0_145 = arith.constant 0 : index
      %199 = vector.load %arg11[%c3_143, %c0_144, %c0_145] : memref<4x8x16xf32, #tpu.memory_space<vmem>>, vector<1x8x16xf32>
      %200 = vector.shape_cast %199 : vector<1x8x16xf32> to vector<8x16xf32>
      %201 = vector.shape_cast %198 : vector<8x16xf32> to vector<1x8x16xf32>
      tpu.vector_store %arg11[%c3_143, %c0_144, %c0_145], %201 {strides = array<i32>} : memref<4x8x16xf32, #tpu.memory_space<vmem>>, vector<1x8x16xf32>,
      %c3_146 = arith.constant 3 : index
      %c0_147 = arith.constant 0 : index
      %c0_148 = arith.constant 0 : index
      %202 = vector.load %arg7[%c3_146, %c0_147, %c0_148] : memref<4x32x16xf32, #tpu.memory_space<vmem>>, vector<1x32x16xf32>
      %203 = vector.shape_cast %202 : vector<1x32x16xf32> to vector<32x16xf32>
      %cst_149 = arith.constant dense<0.000000e+00> : vector<8x16xf32>
      %204 = tpu.matmul %159, %203, %cst_149 {dimension_numbers = #tpu.dot_dimension_numbers<[1], [0], [0], [1], [0, 0, 1, 1], [], []>} : vector<8x32xf32>, vector<32x16xf32>, vector<8x16xf32> -> vector<8x16xf32>
      %c3_150 = arith.constant 3 : index
      %c0_151 = arith.constant 0 : index
      %c0_152 = arith.constant 0 : index
      %205 = vector.load %arg12[%c3_150, %c0_151, %c0_152] : memref<4x8x16xf32, #tpu.memory_space<vmem>>, vector<1x8x16xf32>
      %206 = vector.shape_cast %205 : vector<1x8x16xf32> to vector<8x16xf32>
      %207 = vector.shape_cast %204 : vector<8x16xf32> to vector<1x8x16xf32>
      tpu.vector_store %arg12[%c3_150, %c0_151, %c0_152], %207 {strides = array<i32>} : memref<4x8x16xf32, #tpu.memory_space<vmem>>, vector<1x8x16xf32>,
    } else {
    }
    %c8_i32 = arith.constant 8 : i32
    %5 = arith.muli %arg1, %c8_i32 : i32
    %6 = tpu.assume_multiple %5, 8 : i32
    %c0_4 = arith.constant 0 : index
    %7 = arith.index_cast %6 : i32 to index
    %c0_5 = arith.constant 0 : index
    %8 = vector.load %arg2[%c0_4, %7, %c0_5] : memref<1x8x32xf32, #tpu.memory_space<vmem>>, vector<1x8x32xf32>
    %9 = vector.shape_cast %8 : vector<1x8x32xf32> to vector<8x32xf32>
    %cst = arith.constant dense<0.000000e+00> : vector<8xf32>
    %10 = vector.multi_reduction <add>, %9, %cst [1] : vector<8x32xf32> to vector<8xf32>
    %11 = vector.shape_cast %10 : vector<8xf32> to vector<8x1xf32>
    %cst_6 = arith.constant 3.200000e+01 : f32
    %12 = vector.broadcast %cst_6 : f32 to vector<8x1xf32>
    %13 = arith.divf %11, %12 : vector<8x1xf32>
    %14 = vector.broadcast %13 : vector<8x1xf32> to vector<8x32xf32>
    %15 = arith.subf %9, %14 : vector<8x32xf32>
    %16 = arith.mulf %15, %15 : vector<8x32xf32>
    %cst_7 = arith.constant dense<0.000000e+00> : vector<8xf32>
    %17 = vector.multi_reduction <add>, %16, %cst_7 [1] : vector<8x32xf32> to vector<8xf32>
    %18 = vector.shape_cast %17 : vector<8xf32> to vector<8x1xf32>
    %cst_8 = arith.constant 3.200000e+01 : f32
    %19 = vector.broadcast %cst_8 : f32 to vector<8x1xf32>
    %20 = arith.divf %18, %19 : vector<8x1xf32>
    %21 = vector.broadcast %13 : vector<8x1xf32> to vector<8x32xf32>
    %22 = arith.subf %9, %21 : vector<8x32xf32>
    %cst_9 = arith.constant 9.99999974E-6 : f32
    %23 = vector.broadcast %cst_9 : f32 to vector<8x1xf32>
    %24 = arith.addf %20, %23 : vector<8x1xf32>
    %25 = math.rsqrt %24 : vector<8x1xf32>
    %26 = vector.broadcast %25 : vector<8x1xf32> to vector<8x32xf32>
    %27 = arith.mulf %22, %26 : vector<8x32xf32>
    %28 = vector.broadcast %0 : vector<1x32xf32> to vector<8x32xf32>
    %29 = arith.mulf %27, %28 : vector<8x32xf32>
    %30 = vector.broadcast %1 : vector<1x32xf32> to vector<8x32xf32>
    %31 = arith.addf %29, %30 : vector<8x32xf32>
    %cst_10 = arith.constant 0.000000e+00 : f32
    %32 = vector.broadcast %cst_10 : f32 to vector<8x32xf32>
    %c0_11 = arith.constant 0 : index
    %c0_12 = arith.constant 0 : index
    %c0_13 = arith.constant 0 : index
    %33 = vector.load %arg5[%c0_11, %c0_12, %c0_13] : memref<4x32x16xf32, #tpu.memory_space<vmem>>, vector<1x32x16xf32>
    %34 = vector.shape_cast %33 : vector<1x32x16xf32> to vector<32x16xf32>
    %cst_14 = arith.constant dense<0.000000e+00> : vector<8x16xf32>
    %35 = tpu.matmul %31, %34, %cst_14 {dimension_numbers = #tpu.dot_dimension_numbers<[1], [0], [0], [1], [0, 0, 1, 1], [], []>} : vector<8x32xf32>, vector<32x16xf32>, vector<8x16xf32> -> vector<8x16xf32>
    %c0_15 = arith.constant 0 : index
    %c0_16 = arith.constant 0 : index
    %c0_17 = arith.constant 0 : index
    %36 = vector.load %arg11[%c0_15, %c0_16, %c0_17] : memref<4x8x16xf32, #tpu.memory_space<vmem>>, vector<1x8x16xf32>
    %37 = vector.shape_cast %36 : vector<1x8x16xf32> to vector<8x16xf32>
    %cst_18 = arith.constant dense<0.000000e+00> : vector<8x8xf32>
    %38 = tpu.matmul %35, %37, %cst_18 {dimension_numbers = #tpu.dot_dimension_numbers<[1], [1], [0], [0], [0, 0, 1, 0], [], []>} : vector<8x16xf32>, vector<8x16xf32>, vector<8x8xf32> -> vector<8x8xf32>
    %cst_19 = arith.constant 2.500000e-01 : f32
    %39 = vector.broadcast %cst_19 : f32 to vector<8x8xf32>
    %40 = arith.mulf %38, %39 : vector<8x8xf32>
    %cst_20 = arith.constant dense<0xFF800000> : vector<8xf32>
    %41 = vector.multi_reduction <maximumf>, %40, %cst_20 [1] : vector<8x8xf32> to vector<8xf32>
    %42 = vector.shape_cast %41 : vector<8xf32> to vector<8x1xf32>
    %43 = vector.broadcast %42 : vector<8x1xf32> to vector<8x8xf32>
    %44 = arith.subf %40, %43 : vector<8x8xf32>
    %45 = math.exp %44 : vector<8x8xf32>
    %cst_21 = arith.constant dense<0.000000e+00> : vector<8xf32>
    %46 = vector.multi_reduction <add>, %45, %cst_21 [1] : vector<8x8xf32> to vector<8xf32>
    %47 = vector.shape_cast %46 : vector<8xf32> to vector<8x1xf32>
    %48 = vector.broadcast %47 : vector<8x1xf32> to vector<8x8xf32>
    %49 = arith.divf %45, %48 : vector<8x8xf32>
    %c0_22 = arith.constant 0 : index
    %c0_23 = arith.constant 0 : index
    %c0_24 = arith.constant 0 : index
    %50 = vector.load %arg12[%c0_22, %c0_23, %c0_24] : memref<4x8x16xf32, #tpu.memory_space<vmem>>, vector<1x8x16xf32>
    %51 = vector.shape_cast %50 : vector<1x8x16xf32> to vector<8x16xf32>
    %cst_25 = arith.constant dense<0.000000e+00> : vector<8x16xf32>
    %52 = tpu.matmul %49, %51, %cst_25 {dimension_numbers = #tpu.dot_dimension_numbers<[1], [0], [0], [1], [0, 0, 1, 1], [], []>} : vector<8x8xf32>, vector<8x16xf32>, vector<8x16xf32> -> vector<8x16xf32>
    %c0_26 = arith.constant 0 : index
    %c0_27 = arith.constant 0 : index
    %c0_28 = arith.constant 0 : index
    %53 = vector.load %arg8[%c0_26, %c0_27, %c0_28] : memref<4x16x32xf32, #tpu.memory_space<vmem>>, vector<1x16x32xf32>
    %54 = vector.shape_cast %53 : vector<1x16x32xf32> to vector<16x32xf32>
    %cst_29 = arith.constant dense<0.000000e+00> : vector<8x32xf32>
    %55 = tpu.matmul %52, %54, %cst_29 {dimension_numbers = #tpu.dot_dimension_numbers<[1], [0], [0], [1], [0, 0, 1, 1], [], []>} : vector<8x16xf32>, vector<16x32xf32>, vector<8x32xf32> -> vector<8x32xf32>
    %56 = arith.addf %32, %55 : vector<8x32xf32>
    %c1 = arith.constant 1 : index
    %c0_30 = arith.constant 0 : index
    %c0_31 = arith.constant 0 : index
    %57 = vector.load %arg5[%c1, %c0_30, %c0_31] : memref<4x32x16xf32, #tpu.memory_space<vmem>>, vector<1x32x16xf32>
    %58 = vector.shape_cast %57 : vector<1x32x16xf32> to vector<32x16xf32>
    %cst_32 = arith.constant dense<0.000000e+00> : vector<8x16xf32>
    %59 = tpu.matmul %31, %58, %cst_32 {dimension_numbers = #tpu.dot_dimension_numbers<[1], [0], [0], [1], [0, 0, 1, 1], [], []>} : vector<8x32xf32>, vector<32x16xf32>, vector<8x16xf32> -> vector<8x16xf32>
    %c1_33 = arith.constant 1 : index
    %c0_34 = arith.constant 0 : index
    %c0_35 = arith.constant 0 : index
    %60 = vector.load %arg11[%c1_33, %c0_34, %c0_35] : memref<4x8x16xf32, #tpu.memory_space<vmem>>, vector<1x8x16xf32>
    %61 = vector.shape_cast %60 : vector<1x8x16xf32> to vector<8x16xf32>
    %cst_36 = arith.constant dense<0.000000e+00> : vector<8x8xf32>
    %62 = tpu.matmul %59, %61, %cst_36 {dimension_numbers = #tpu.dot_dimension_numbers<[1], [1], [0], [0], [0, 0, 1, 0], [], []>} : vector<8x16xf32>, vector<8x16xf32>, vector<8x8xf32> -> vector<8x8xf32>
    %cst_37 = arith.constant 2.500000e-01 : f32
    %63 = vector.broadcast %cst_37 : f32 to vector<8x8xf32>
    %64 = arith.mulf %62, %63 : vector<8x8xf32>
    %cst_38 = arith.constant dense<0xFF800000> : vector<8xf32>
    %65 = vector.multi_reduction <maximumf>, %64, %cst_38 [1] : vector<8x8xf32> to vector<8xf32>
    %66 = vector.shape_cast %65 : vector<8xf32> to vector<8x1xf32>
    %67 = vector.broadcast %66 : vector<8x1xf32> to vector<8x8xf32>
    %68 = arith.subf %64, %67 : vector<8x8xf32>
    %69 = math.exp %68 : vector<8x8xf32>
    %cst_39 = arith.constant dense<0.000000e+00> : vector<8xf32>
    %70 = vector.multi_reduction <add>, %69, %cst_39 [1] : vector<8x8xf32> to vector<8xf32>
    %71 = vector.shape_cast %70 : vector<8xf32> to vector<8x1xf32>
    %72 = vector.broadcast %71 : vector<8x1xf32> to vector<8x8xf32>
    %73 = arith.divf %69, %72 : vector<8x8xf32>
    %c1_40 = arith.constant 1 : index
    %c0_41 = arith.constant 0 : index
    %c0_42 = arith.constant 0 : index
    %74 = vector.load %arg12[%c1_40, %c0_41, %c0_42] : memref<4x8x16xf32, #tpu.memory_space<vmem>>, vector<1x8x16xf32>
    %75 = vector.shape_cast %74 : vector<1x8x16xf32> to vector<8x16xf32>
    %cst_43 = arith.constant dense<0.000000e+00> : vector<8x16xf32>
    %76 = tpu.matmul %73, %75, %cst_43 {dimension_numbers = #tpu.dot_dimension_numbers<[1], [0], [0], [1], [0, 0, 1, 1], [], []>} : vector<8x8xf32>, vector<8x16xf32>, vector<8x16xf32> -> vector<8x16xf32>
    %c1_44 = arith.constant 1 : index
    %c0_45 = arith.constant 0 : index
    %c0_46 = arith.constant 0 : index
    %77 = vector.load %arg8[%c1_44, %c0_45, %c0_46] : memref<4x16x32xf32, #tpu.memory_space<vmem>>, vector<1x16x32xf32>
    %78 = vector.shape_cast %77 : vector<1x16x32xf32> to vector<16x32xf32>
    %cst_47 = arith.constant dense<0.000000e+00> : vector<8x32xf32>
    %79 = tpu.matmul %76, %78, %cst_47 {dimension_numbers = #tpu.dot_dimension_numbers<[1], [0], [0], [1], [0, 0, 1, 1], [], []>} : vector<8x16xf32>, vector<16x32xf32>, vector<8x32xf32> -> vector<8x32xf32>
    %80 = arith.addf %56, %79 : vector<8x32xf32>
    %c2 = arith.constant 2 : index
    %c0_48 = arith.constant 0 : index
    %c0_49 = arith.constant 0 : index
    %81 = vector.load %arg5[%c2, %c0_48, %c0_49] : memref<4x32x16xf32, #tpu.memory_space<vmem>>, vector<1x32x16xf32>
    %82 = vector.shape_cast %81 : vector<1x32x16xf32> to vector<32x16xf32>
    %cst_50 = arith.constant dense<0.000000e+00> : vector<8x16xf32>
    %83 = tpu.matmul %31, %82, %cst_50 {dimension_numbers = #tpu.dot_dimension_numbers<[1], [0], [0], [1], [0, 0, 1, 1], [], []>} : vector<8x32xf32>, vector<32x16xf32>, vector<8x16xf32> -> vector<8x16xf32>
    %c2_51 = arith.constant 2 : index
    %c0_52 = arith.constant 0 : index
    %c0_53 = arith.constant 0 : index
    %84 = vector.load %arg11[%c2_51, %c0_52, %c0_53] : memref<4x8x16xf32, #tpu.memory_space<vmem>>, vector<1x8x16xf32>
    %85 = vector.shape_cast %84 : vector<1x8x16xf32> to vector<8x16xf32>
    %cst_54 = arith.constant dense<0.000000e+00> : vector<8x8xf32>
    %86 = tpu.matmul %83, %85, %cst_54 {dimension_numbers = #tpu.dot_dimension_numbers<[1], [1], [0], [0], [0, 0, 1, 0], [], []>} : vector<8x16xf32>, vector<8x16xf32>, vector<8x8xf32> -> vector<8x8xf32>
    %cst_55 = arith.constant 2.500000e-01 : f32
    %87 = vector.broadcast %cst_55 : f32 to vector<8x8xf32>
    %88 = arith.mulf %86, %87 : vector<8x8xf32>
    %cst_56 = arith.constant dense<0xFF800000> : vector<8xf32>
    %89 = vector.multi_reduction <maximumf>, %88, %cst_56 [1] : vector<8x8xf32> to vector<8xf32>
    %90 = vector.shape_cast %89 : vector<8xf32> to vector<8x1xf32>
    %91 = vector.broadcast %90 : vector<8x1xf32> to vector<8x8xf32>
    %92 = arith.subf %88, %91 : vector<8x8xf32>
    %93 = math.exp %92 : vector<8x8xf32>
    %cst_57 = arith.constant dense<0.000000e+00> : vector<8xf32>
    %94 = vector.multi_reduction <add>, %93, %cst_57 [1] : vector<8x8xf32> to vector<8xf32>
    %95 = vector.shape_cast %94 : vector<8xf32> to vector<8x1xf32>
    %96 = vector.broadcast %95 : vector<8x1xf32> to vector<8x8xf32>
    %97 = arith.divf %93, %96 : vector<8x8xf32>
    %c2_58 = arith.constant 2 : index
    %c0_59 = arith.constant 0 : index
    %c0_60 = arith.constant 0 : index
    %98 = vector.load %arg12[%c2_58, %c0_59, %c0_60] : memref<4x8x16xf32, #tpu.memory_space<vmem>>, vector<1x8x16xf32>
    %99 = vector.shape_cast %98 : vector<1x8x16xf32> to vector<8x16xf32>
    %cst_61 = arith.constant dense<0.000000e+00> : vector<8x16xf32>
    %100 = tpu.matmul %97, %99, %cst_61 {dimension_numbers = #tpu.dot_dimension_numbers<[1], [0], [0], [1], [0, 0, 1, 1], [], []>} : vector<8x8xf32>, vector<8x16xf32>, vector<8x16xf32> -> vector<8x16xf32>
    %c2_62 = arith.constant 2 : index
    %c0_63 = arith.constant 0 : index
    %c0_64 = arith.constant 0 : index
    %101 = vector.load %arg8[%c2_62, %c0_63, %c0_64] : memref<4x16x32xf32, #tpu.memory_space<vmem>>, vector<1x16x32xf32>
    %102 = vector.shape_cast %101 : vector<1x16x32xf32> to vector<16x32xf32>
    %cst_65 = arith.constant dense<0.000000e+00> : vector<8x32xf32>
    %103 = tpu.matmul %100, %102, %cst_65 {dimension_numbers = #tpu.dot_dimension_numbers<[1], [0], [0], [1], [0, 0, 1, 1], [], []>} : vector<8x16xf32>, vector<16x32xf32>, vector<8x32xf32> -> vector<8x32xf32>
    %104 = arith.addf %80, %103 : vector<8x32xf32>
    %c3 = arith.constant 3 : index
    %c0_66 = arith.constant 0 : index
    %c0_67 = arith.constant 0 : index
    %105 = vector.load %arg5[%c3, %c0_66, %c0_67] : memref<4x32x16xf32, #tpu.memory_space<vmem>>, vector<1x32x16xf32>
    %106 = vector.shape_cast %105 : vector<1x32x16xf32> to vector<32x16xf32>
    %cst_68 = arith.constant dense<0.000000e+00> : vector<8x16xf32>
    %107 = tpu.matmul %31, %106, %cst_68 {dimension_numbers = #tpu.dot_dimension_numbers<[1], [0], [0], [1], [0, 0, 1, 1], [], []>} : vector<8x32xf32>, vector<32x16xf32>, vector<8x16xf32> -> vector<8x16xf32>
    %c3_69 = arith.constant 3 : index
    %c0_70 = arith.constant 0 : index
    %c0_71 = arith.constant 0 : index
    %108 = vector.load %arg11[%c3_69, %c0_70, %c0_71] : memref<4x8x16xf32, #tpu.memory_space<vmem>>, vector<1x8x16xf32>
    %109 = vector.shape_cast %108 : vector<1x8x16xf32> to vector<8x16xf32>
    %cst_72 = arith.constant dense<0.000000e+00> : vector<8x8xf32>
    %110 = tpu.matmul %107, %109, %cst_72 {dimension_numbers = #tpu.dot_dimension_numbers<[1], [1], [0], [0], [0, 0, 1, 0], [], []>} : vector<8x16xf32>, vector<8x16xf32>, vector<8x8xf32> -> vector<8x8xf32>
    %cst_73 = arith.constant 2.500000e-01 : f32
    %111 = vector.broadcast %cst_73 : f32 to vector<8x8xf32>
    %112 = arith.mulf %110, %111 : vector<8x8xf32>
    %cst_74 = arith.constant dense<0xFF800000> : vector<8xf32>
    %113 = vector.multi_reduction <maximumf>, %112, %cst_74 [1] : vector<8x8xf32> to vector<8xf32>
    %114 = vector.shape_cast %113 : vector<8xf32> to vector<8x1xf32>
    %115 = vector.broadcast %114 : vector<8x1xf32> to vector<8x8xf32>
    %116 = arith.subf %112, %115 : vector<8x8xf32>
    %117 = math.exp %116 : vector<8x8xf32>
    %cst_75 = arith.constant dense<0.000000e+00> : vector<8xf32>
    %118 = vector.multi_reduction <add>, %117, %cst_75 [1] : vector<8x8xf32> to vector<8xf32>
    %119 = vector.shape_cast %118 : vector<8xf32> to vector<8x1xf32>
    %120 = vector.broadcast %119 : vector<8x1xf32> to vector<8x8xf32>
    %121 = arith.divf %117, %120 : vector<8x8xf32>
    %c3_76 = arith.constant 3 : index
    %c0_77 = arith.constant 0 : index
    %c0_78 = arith.constant 0 : index
    %122 = vector.load %arg12[%c3_76, %c0_77, %c0_78] : memref<4x8x16xf32, #tpu.memory_space<vmem>>, vector<1x8x16xf32>
    %123 = vector.shape_cast %122 : vector<1x8x16xf32> to vector<8x16xf32>
    %cst_79 = arith.constant dense<0.000000e+00> : vector<8x16xf32>
    %124 = tpu.matmul %121, %123, %cst_79 {dimension_numbers = #tpu.dot_dimension_numbers<[1], [0], [0], [1], [0, 0, 1, 1], [], []>} : vector<8x8xf32>, vector<8x16xf32>, vector<8x16xf32> -> vector<8x16xf32>
    %c3_80 = arith.constant 3 : index
    %c0_81 = arith.constant 0 : index
    %c0_82 = arith.constant 0 : index
    %125 = vector.load %arg8[%c3_80, %c0_81, %c0_82] : memref<4x16x32xf32, #tpu.memory_space<vmem>>, vector<1x16x32xf32>
    %126 = vector.shape_cast %125 : vector<1x16x32xf32> to vector<16x32xf32>
    %cst_83 = arith.constant dense<0.000000e+00> : vector<8x32xf32>
    %127 = tpu.matmul %124, %126, %cst_83 {dimension_numbers = #tpu.dot_dimension_numbers<[1], [0], [0], [1], [0, 0, 1, 1], [], []>} : vector<8x16xf32>, vector<16x32xf32>, vector<8x32xf32> -> vector<8x32xf32>
    %128 = arith.addf %104, %127 : vector<8x32xf32>
    %c0_84 = arith.constant 0 : index
    %c0_85 = arith.constant 0 : index
    %129 = vector.load %arg9[%c0_84, %c0_85] : memref<1x32xf32, #tpu.memory_space<vmem>>, vector<1x32xf32>
    %130 = vector.broadcast %129 : vector<1x32xf32> to vector<8x32xf32>
    %131 = arith.addf %128, %130 : vector<8x32xf32>
    %132 = arith.addf %131, %9 : vector<8x32xf32>
    %c0_86 = arith.constant 0 : index
    %c0_87 = arith.constant 0 : index
    %c0_88 = arith.constant 0 : index
    %133 = vector.load %arg10[%c0_86, %c0_87, %c0_88] : memref<1x8x32xf32, #tpu.memory_space<vmem>>, vector<1x8x32xf32>
    %134 = vector.shape_cast %133 : vector<1x8x32xf32> to vector<8x32xf32>
    %135 = vector.shape_cast %132 : vector<8x32xf32> to vector<1x8x32xf32>
    tpu.vector_store %arg10[%c0_86, %c0_87, %c0_88], %135 {strides = array<i32>} : memref<1x8x32xf32, #tpu.memory_space<vmem>>, vector<1x8x32xf32>,
    return
  }
  func.func @transform_0(%arg0: i32, %arg1: i32) -> (i32, i32, i32) {
    %c0_i32 = arith.constant 0 : i32
    %c0_i32_0 = arith.constant 0 : i32
    %c0_i32_1 = arith.constant 0 : i32
    return %arg0, %c0_i32, %c0_i32_0 : i32, i32, i32
  }
  func.func @transform_1(%arg0: i32, %arg1: i32) -> (i32, i32) {
    %c0_i32 = arith.constant 0 : i32
    %c0_i32_0 = arith.constant 0 : i32
    %c0_i32_1 = arith.constant 0 : i32
    return %c0_i32, %c0_i32_0 : i32, i32
  }
  func.func @transform_2(%arg0: i32, %arg1: i32) -> (i32, i32) {
    %c0_i32 = arith.constant 0 : i32
    %c0_i32_0 = arith.constant 0 : i32
    %c0_i32_1 = arith.constant 0 : i32
    return %c0_i32, %c0_i32_0 : i32, i32
  }
  func.func @transform_3(%arg0: i32, %arg1: i32) -> (i32, i32, i32) {
    %c0_i32 = arith.constant 0 : i32
    %c0_i32_0 = arith.constant 0 : i32
    %c0_i32_1 = arith.constant 0 : i32
    %c0_i32_2 = arith.constant 0 : i32
    return %c0_i32, %c0_i32_0, %c0_i32_1 : i32, i32, i32
  }
  func.func @transform_4(%arg0: i32, %arg1: i32) -> (i32, i32, i32) {
    %c0_i32 = arith.constant 0 : i32
    %c0_i32_0 = arith.constant 0 : i32
    %c0_i32_1 = arith.constant 0 : i32
    %c0_i32_2 = arith.constant 0 : i32
    return %c0_i32, %c0_i32_0, %c0_i32_1 : i32, i32, i32
  }
  func.func @transform_5(%arg0: i32, %arg1: i32) -> (i32, i32, i32) {
    %c0_i32 = arith.constant 0 : i32
    %c0_i32_0 = arith.constant 0 : i32
    %c0_i32_1 = arith.constant 0 : i32
    %c0_i32_2 = arith.constant 0 : i32
    return %c0_i32, %c0_i32_0, %c0_i32_1 : i32, i32, i32
  }
  func.func @transform_6(%arg0: i32, %arg1: i32) -> (i32, i32, i32) {
    %c0_i32 = arith.constant 0 : i32
    %c0_i32_0 = arith.constant 0 : i32
    %c0_i32_1 = arith.constant 0 : i32
    %c0_i32_2 = arith.constant 0 : i32
    return %c0_i32, %c0_i32_0, %c0_i32_1 : i32, i32, i32
  }
  func.func @transform_7(%arg0: i32, %arg1: i32) -> (i32, i32) {
    %c0_i32 = arith.constant 0 : i32
    %c0_i32_0 = arith.constant 0 : i32
    %c0_i32_1 = arith.constant 0 : i32
    return %c0_i32, %c0_i32_0 : i32, i32
  }
  func.func @transform_8(%arg0: i32, %arg1: i32) -> (i32, i32, i32) {
    %c0_i32 = arith.constant 0 : i32
    %c0_i32_0 = arith.constant 0 : i32
    return %arg0, %arg1, %c0_i32 : i32, i32, i32
  }
}

</mosaic_0001>

<bundles_post_ra>
// kernel: tpu_custom_call.1
= control target key start
LH: loop header
LB: loop body
LE: loop exit
PB: predicated region body
PF: predicated region fallthrough
CT: control target
= control target key end

     0   :  { %6 = vsyncpa [#allocation3], 0  ;;  %s487_s0 = inlined_call_operand.hbm [shape: f32[2,8,128], index: 0, kind: input, shape index: {}]   ;;  %s488_s1 = inlined_call_operand.hbm [shape: f32[16,128], index: 1, kind: output, shape index: {}]  }
   0x1   :  { %7 = vsyncpa [#allocation4], 0 }
   0x2   :  { %9 = vsyncpa [#allocation4 + $0x1], 0  ;;  %s357_s6 = smov 0   ;;  %s359_s7 = smov 0  }
   0x3   :  { %s361_s8 = smov 0   ;;  %s363_s9 = smov 0  }
   0x4 LB: > { %s378_s10 = sadd.s32 4294967295, %s341_s9   ;;  %s185_s11 = sadd.s32 4294967294, %s341_s9   ;;  %s341_s9 = sphi %s363_s9, %s504_s9   ;;  %s337_s8 = sphi %s361_s8, %s503_s8   ;;  %s333_s7 = sphi %s359_s7, %s502_s7   ;;  %s329_s6 = sphi %s357_s6, %s501_s6  }
   0x5   : > { %s382_s12 = sadd.s32 1, %s341_s9   ;;  %s43_s13 = sadd.s32 1, %s337_s8 }
   0x6   : > { %s40_s14 = ssub.s32 %s341_s9, %s382_s12  ;;  %p53_p0 = scmp.ne.s32.totalorder %s337_s8, %s333_s7 }
   0x7   : > { %p41_p1 = scmp.eq.s32.totalorder %s40_s14, 0  ;;  %p54_p2 = scmp.eq.s32.totalorder %s378_s10, 1 }
   0x8   : > { %p59_p3 = scmp.ne.s32.totalorder %s333_s7, %s329_s6  ;;  %p60_p4 = scmp.eq.s32.totalorder %s185_s11, 1 }
   0x9   : > { %s393_s15 = scalar_select %p41_p1, %s337_s8, %s43_s13  }
   0xa   : > { %p395_p5 = por %p54_p2, %p53_p0  ;;  %p399_p6 = por %p60_p4, %p59_p3 }
   0xb   : > { %p186_p7 = scmp.ge.s32.totalorder %s341_s9, 1  ;;  %p67_p8 = scmp.lt.s32.totalorder %s341_s9, 3 }
   0xc   : > { %s492_s16 = scalar_select %p395_p5, 1, 0 }
   0xd   : > { %s493_s17 = scalar_select %p399_p6, 1, 0 }
   0xe   : > { %p489_p9 = scmp.eq.s32.totalorder %s378_s10, 0  ;;  %p406_p10 = pnand %p186_p7, %p67_p8 }
   0xf   : > { %s343_s19 = smov [#allocation2]   ;;  %s247_s24 = scalar_lea.hbm %s487_s0, 256 }
  0x10   : > { %s494_s18 = scalar_select %p406_p10, 1, 0 }
  0x11   : > { %s79_s20 = sshll.u32 %s343_s19, 4  ;;  %p201_p11 = pneg %p406_p10  ;;  %s80_s20 = int_to_ptr.vmem [resolvable:$true] %s79_s20 }
  0x12   : > { %p248_p13 = scmp.ne.s32.totalorder %s487_s0, %s247_s24  ;;  %p254_p3 = scmp.lt.u32.totalorder %s247_s24, %s487_s0 }
  0x13   : > { %p414_p12 = pnand %p489_p9, %p201_p11 }
  0x15   : > { %p249_p0 = pneg %p414_p12 }
  0x17   : > { %p250_p1 = pnand %p249_p0, %p248_p13 }
  0x19   : > { %p251_p2 = pneg %p250_p1 }
  0x1b   : > { %p256_p4 = pnand %p254_p3, %p251_p2 }
  0x1d   : > { %259 = shalt.err (!%p256_p4)
}
  0x1e   : > { %s260_s29 = scalar_lea.vmem %s80_s20, 256  ;;  %p268_p9 = scmp.lt.s32.totalorder %s80_s20, %s80_s20 }
  0x1f   : > { %p261_p7 = scmp.ne.s32.totalorder %s80_s20, %s260_s29  ;;  %p269_p6 = scmp.lt.s32.totalorder %s260_s29, %s260_s29 }
  0x21   : > { %p263_p8 = pnand %p261_p7, %p249_p0  ;;  %p270_p5 = por %p269_p6, %p268_p9 }
  0x23   : > { %p264_p11 = pneg %p263_p8 }
  0x25   : > { %p271_p10 = pnand %p270_p5, %p264_p11 }
  0x27   : > { %274 = shalt.err (!%p271_p10)
}
  0x28   : > { %s344_s30 = smov 128   ;;  %s345_s2 = smov 8  }
  0x29   : > { %204 = dma.hbm_to_vmem [thread:$0]  (!%p414_p12), %s487_s0, 256, %s80_s20, [#allocation3], %s344_s30, %s344_s30, %s345_s2  }
  0x2a   : > { %p496_p13 = scmp.ne.s32.totalorder %s494_s18, 0 }
  0x2b   : > { %p497_p1 = scmp.eq.s32.totalorder (!%p496_p13), %s378_s10, 0 }
  0x2c   : > { %95 = sbr.rel (%p496_p13) target bundleno = 78 (0x4e), region = 24 }
  0x33   : > { %320 = dma.done.wait (%p497_p1), [#allocation3], 256   ;;  %p498_p0 = pmov %p497_p1 }
  0x34   : > { %s107_s5 = sand.u32 1, %s333_s7   ;;  %s192_s19 = sshll.u32 %s378_s10, 7  ;;  %v110_v0 = vld [vmem:[#allocation2] sm:$0xff] }
  0x35   : > { %322 = vsyncadd (%p498_p0), [#allocation3], 4294967040  ;;  %s190_s11 = sshll.u32 %s107_s5, 3  ;;  %s447_s18 = scalar_lea.hbm %s488_s1, %s192_s19 }
  0x36   : > { %s109_s13 = scalar_lea.vmem [#allocation5], %s190_s11  ;;  %s113_s22 = scalar_lea.sflag [#allocation4], %s107_s5 }
  0x37   : > { %s126_s14 = sshll.u32 %s109_s13, 4  ;;  %111 = vst [vmem:[%s109_s13] sm:$0xff] %v110_v0  ;;  %p499_p6 = scmp.ne.s32.totalorder %s492_s16, 0  ;;  %s442_s14 = int_to_ptr.vmem [resolvable:$true] %s126_s14 }
  0x38   : > { %s275_s23 = scalar_lea.vmem %s442_s14, 128  ;;  %s346_s24 = smov [#allocation5]  }
  0x39   : > { %p276_p5 = scmp.ne.s32.totalorder %s442_s14, %s275_s23  ;;  %s279_s10 = sshll.u32 %s346_s24, 4  ;;  %s280_s10 = int_to_ptr.vmem [resolvable:$false] %s279_s10 }
  0x3a   : > { %s281_s25 = scalar_lea.vmem %s280_s10, 256  ;;  %p282_p12 = scmp.lt.s32.totalorder %s442_s14, %s280_s10 }
  0x3b   : > { %p277_p9 = pnand %p276_p5, %p499_p6  ;;  %p283_p2 = scmp.lt.s32.totalorder %s281_s25, %s275_s23 }
  0x3d   : > { %p278_p10 = pneg %p277_p9  ;;  %p284_p3 = por %p283_p2, %p282_p12 }
  0x3f   : > { %p285_p4 = pnand %p284_p3, %p278_p10 }
  0x41   : > { %288 = shalt.err (!%p285_p4)
}
  0x42   : > { %s289_s26 = scalar_lea.hbm %s447_s18, 128  ;;  %s293_s29 = scalar_lea.hbm %s488_s1, 256 }
  0x43   : > { %p290_p7 = scmp.ne.s32.totalorder %s447_s18, %s289_s26  ;;  %p294_p13 = scmp.lt.u32.totalorder %s447_s18, %s488_s1 }
  0x44   : > { %p295_p1 = scmp.lt.u32.totalorder %s293_s29, %s289_s26  ;;  %p297_p5 = scmp.lt.u32.totalorder %s289_s26, %s447_s18 }
  0x45   : > { %p291_p8 = pnand %p290_p7, %p499_p6 }
  0x46   : > { %p296_p0 = por %p295_p1, %p294_p13 }
  0x47   : > { %p292_p11 = pneg %p291_p8 }
  0x48   : > { %p298_p9 = por %p297_p5, %p296_p0 }
  0x4a   : > { %p299_p10 = pnand %p298_p9, %p292_p11 }
  0x4c   : > { %302 = shalt.err (!%p299_p10)
}
  0x4d   : > { %199 = dma.vmem_to_hbm [thread:$0]  (%p499_p6), %s442_s14, 128, %s447_s18, %s113_s22  }
  0x4e PF: > { %p211_p12 = scmp.ge.s32.totalorder %s341_s9, 2  ;;  %s138_s3 = sand.u32 1, %s329_s6  }
  0x4f   : > { %p500_p2 = scmp.ne.s32.totalorder %s493_s17, 0  ;;  %s139_s4 = scalar_lea.sflag [#allocation4], %s138_s3 }
  0x51   : > { %p206_p3 = pnand %p211_p12, %p500_p2 }
  0x53   : > { %324 = dma.done.wait (!%p206_p3), %s139_s4, 128  }
  0x54   : > { %326 = vsyncadd (!%p206_p3), %s139_s4, 4294967168  ;;  %p12_p4 = scmp.ge.s32.totalorder %s382_s12, 4   ;;  %s501_s6 = smov %s333_s7 }
  0x55   : > { %s502_s7 = smov %s337_s8  ;;  %s503_s8 = smov %s393_s15 }
  0x56   : > { %s504_s9 = smov %s382_s12  ;;  %14 = sbr.rel (!%p12_p4) target bundleno = 4 (0x4), region = 61 }
  0x5d   :  { %144 = vsyncpa [#allocation3], 1 }
  0x5e   :  { %146 = vsyncpa [#allocation3 + $0x1], 1 }
  0x5f   :  { %147 = vsyncpa [#allocation4], 1 }
  0x60   :  { %149 = vsyncpa [#allocation4 + $0x1], 1 }

// kernel: tpu_custom_call.1
= control target key start
LH: loop header
LB: loop body
LE: loop exit
PB: predicated region body
PF: predicated region fallthrough
CT: control target
= control target key end

     0   :  { %13 = vsyncpa [#allocation5], 0  ;;  %s3480_s0 = inlined_call_operand.vmem [shape: f32[2,8,32], index: 0, kind: input, shape index: {}]   ;;  %s3481_s1 = inlined_call_operand.vmem [shape: f32[1,32], index: 1, kind: input, shape index: {}]   ;;  %s3482_s2 = inlined_call_operand.vmem [shape: f32[1,32], index: 2, kind: input, shape index: {}]   ;;  %s3483_s3 = inlined_call_operand.vmem [shape: f32[4,32,16], index: 3, kind: input, shape index: {}]   ;;  %s3484_s4 = inlined_call_operand.vmem [shape: f32[4,32,16], index: 4, kind: input, shape index: {}]   ;;  %s3485_s5 = inlined_call_operand.vmem [shape: f32[4,32,16], index: 5, kind: input, shape index: {}]   ;;  %s3486_s6 = inlined_call_operand.vmem [shape: f32[4,16,32], index: 6, kind: input, shape index: {}]   ;;  %s3487_s7 = inlined_call_operand.vmem [shape: f32[1,32], index: 7, kind: input, shape index: {}]   ;;  %s3488_s8 = inlined_call_operand.hbm [shape: f32[2,8,32], index: 8, kind: output, shape index: {}]  }
   0x1   :  { %15 = vsyncpa [#allocation5 + $0x1], 0  ;;  %s3024_s27 = smov 0   ;;  %s3026_s28 = smov 0  }
   0x2   :  { %s3028_s29 = smov 0   ;;  %s3030_s30 = smov 0  }
   0x3   :  { %s3032_s9 = smov 0   ;;  %s3034_s10 = smov 0  }
   0x4 LB: > { %s2361_s11 = sadd.s32 4294967295, %s2973_s10   ;;  %s2362_s12 = sadd.s32 4294967294, %s2973_s10   ;;  %s2973_s10 = sphi %s3034_s10, %s21_s10   ;;  %s2969_s9 = sphi %s3032_s9, %s3495_s9   ;;  %s2965_s30 = sphi %s3030_s30, %s3494_s30   ;;  %s2961_s29 = sphi %s3028_s29, %s3493_s29   ;;  %s2957_s28 = sphi %s3026_s28, %s3492_s28   ;;  %s2953_s27 = sphi %s3024_s27, %s3491_s27  }
   0x5   : > { %s33_s13 = sadd.s32 1, %s2969_s9  ;;  %s215_s14 = sadd.s32 1, %s2961_s29 }
   0x6   : > { %p35_p0 = scmp.ge.s32.totalorder %s33_s13, 2  ;;  %p225_p1 = scmp.ne.s32.totalorder %s2961_s29, %s2957_s28 }
   0x7   : > { %p226_p2 = scmp.eq.s32.totalorder %s2361_s11, 1  ;;  %p231_p3 = scmp.ne.s32.totalorder %s2957_s28, %s2953_s27 }
   0x8   : > { %s3497_s13 = smov (%p35_p0, %s33_s13), 0  ;;  %p232_p5 = scmp.eq.s32.totalorder %s2362_s12, 1 }
   0x9   : > { %p3064_p4 = por %p226_p2, %p225_p1  ;;  %s210_s16 = ssub.s32 %s2969_s9, %s3497_s13 }
   0xa   : > { %p2365_p6 = scmp.ge.s32.totalorder %s2973_s10, 1  ;;  %p213_p7 = scmp.eq.s32.totalorder %s210_s16, 0 }
   0xb   : > { %p3071_p8 = por %p232_p5, %p231_p3  ;;  %p278_p9 = scmp.lt.s32.totalorder %s2973_s10, 3 }
   0xc   : > { %s3077_s18 = scalar_select %p213_p7, %s2961_s29, %s215_s14  }
   0xd   : > { %p279_p10 = pnand %p2365_p6, %p278_p9 }
   0xe   : > { %p311_p11 = scmp.lt.s32.totalorder (!%p279_p10), %s2965_s30, 1  ;;  %vm322_vm0 = vcmask (!%p279_p10), 261120   ;;  %v351_v12 = vld [vmem:[%s3484_s4] sm:$0xff] (!%p279_p10)  ;;  %v352_v13 = vld [vmem:[%s3484_s4 + $0x8] sm:$0xff] (!%p279_p10)  ;;  %v2975_v17 = vmov (!%p279_p10), 0.0|0.0   ;;  %v353_v19 = vld [vmem:[%s3484_s4 + $0x10] sm:$0xff] (!%p279_p10) }
   0xf   : > { %282 = sbr.rel (%p279_p10) target bundleno = 3796 (0xed4), region = 52  ;;  %v430_v14 = vld [vmem:[%s3485_s5] sm:$0xff] (!%p279_p10)  ;;  %v2734_v15 = vpack.c.bf16 (!%p279_p10), %v352_v13, %v351_v12  ;;  %v431_v16 = vld [vmem:[%s3485_s5 + $0x8] sm:$0xff] (!%p279_p10)  ;;  %2733 = vmatprep.subr.bf16.mxu0 (!%p279_p10), %v2975_v17  ;;  %2739 = vmatprep.subr.bf16.mxu1 (!%p279_p10), %v2975_v17  ;;  %v354_v20 = vld [vmem:[%s3484_s4 + $0x18] sm:$0xff] (!%p279_p10)  ;;  %vm2976_vm1 = vmmov (!%p279_p10), 0   ;;  %v2977_v25 = vmov (!%p279_p10), 0.0  }
  0x10   : > { %v2740_v18 = vpack.c.bf16 (!%p279_p10), %v431_v16, %v430_v14  ;;  %v432_v21 = vld [vmem:[%s3485_s5 + $0x10] sm:$0xff] (!%p279_p10)  ;;  %v2737_v22 = vpack.c.bf16 (!%p279_p10), %v354_v20, %v353_v19  ;;  %v433_v23 = vld [vmem:[%s3485_s5 + $0x18] sm:$0xff] (!%p279_p10)  ;;  %2541 = vmatprep.mubr.msk.f32.mxu0 (!%p279_p10), %vm2976_vm1, %v2977_v25  ;;  %2552 = vmatprep.mubr.msk.f32.mxu1 (!%p279_p10), %vm2976_vm1, %v2977_v25  ;;  %v3133_v30 = vld [vmem:[%s3481_s1] ss:$0 sm:$0xff] (!%p279_p10)  ;;  %vm428_vm2 = vcmask (!%p279_p10), 130048   ;;  %vm1155_vm3 = vcmask (!%p279_p10), 64512  }
  0x11   : > { %2735 = vmatpush3.bf16.msra.mxu0 (!%p279_p10), %v2734_v15  ;;  %v2743_v24 = vpack.c.bf16 (!%p279_p10), %v433_v23, %v432_v21  ;;  %v2370_v31 = vld [vmem:[%s3484_s4 + $0x20] sm:$0xff] (!%p279_p10)  ;;  %v2371_v33 = vld [vmem:[%s3484_s4 + $0x28] sm:$0xff] (!%p279_p10)  ;;  %v2372_v40 = vld [vmem:[%s3484_s4 + $0x30] sm:$0xff] (!%p279_p10)  ;;  %s2440_s24 = sshll.u32 (!%p279_p10), %s2965_s30, 7 }
  0x12   : > { %2741 = vmatpush3.bf16.msra.mxu1 (!%p279_p10), %v2740_v18  ;;  %2736 = vmatprep.subr.bf16.mxu0 (!%p279_p10), %v2975_v17  ;;  %v2375_v34 = vld [vmem:[%s3485_s5 + $0x20] sm:$0xff] (!%p279_p10)  ;;  %v2376_v35 = vld [vmem:[%s3485_s5 + $0x28] sm:$0xff] (!%p279_p10)  ;;  %v2746_v38 = vpack.c.bf16 (!%p279_p10), %v2371_v33, %v2370_v31  ;;  %v2373_v43 = vld [vmem:[%s3484_s4 + $0x38] sm:$0xff] (!%p279_p10)  ;;  %s3432_s14 = scalar_lea.hbm (!%p279_p10), %s3488_s8, %s2440_s24 }
  0x13   : > { %2742 = vmatprep.subr.bf16.mxu1 (!%p279_p10), %v2975_v17  ;;  %v3150_v36 = vld [vmem:[%s3482_s2] ss:$0 sm:$0xff] (!%p279_p10)  ;;  %v2752_v39 = vpack.c.bf16 (!%p279_p10), %v2376_v35, %v2375_v34  ;;  %v2377_v44 = vld [vmem:[%s3485_s5 + $0x30] sm:$0xff] (!%p279_p10)  ;;  %v2378_v45 = vld [vmem:[%s3485_s5 + $0x38] sm:$0xff] (!%p279_p10)  ;;  %v2749_v47 = vpack.c.bf16 (!%p279_p10), %v2373_v43, %v2372_v40 }
  0x14   : > { %v2755_v48 = vpack.c.bf16 (!%p279_p10), %v2378_v45, %v2377_v44  ;;  %v2380_v49 = vld [vmem:[%s3484_s4 + $0x40] sm:$0xff] (!%p279_p10)  ;;  %v2381_v50 = vld [vmem:[%s3484_s4 + $0x48] sm:$0xff] (!%p279_p10)  ;;  %v2382_v56 = vld [vmem:[%s3484_s4 + $0x50] sm:$0xff] (!%p279_p10) }
  0x15   : > { %2738 = vmatpush3.bf16.msra.mxu0 (!%p279_p10), %v2737_v22  ;;  %v2385_v51 = vld [vmem:[%s3485_s5 + $0x40] sm:$0xff] (!%p279_p10)  ;;  %v2386_v52 = vld [vmem:[%s3485_s5 + $0x48] sm:$0xff] (!%p279_p10)  ;;  %v2758_v54 = vpack.c.bf16 (!%p279_p10), %v2381_v50, %v2380_v49  ;;  %v2383_v57 = vld [vmem:[%s3484_s4 + $0x58] sm:$0xff] (!%p279_p10) }
  0x16   : > { %s312_s19 = scalar_select %p311_p11, %s2965_s30, 1  ;;  %2744 = vmatpush3.bf16.msra.mxu1 %v2743_v24  ;;  %2745 = vmatprep.subr.bf16.mxu0 %v2975_v17  ;;  %v2764_v55 = vpack.c.bf16 %v2386_v52, %v2385_v51  ;;  %v2387_v58 = vld [vmem:[%s3485_s5 + $0x50] sm:$0xff]  ;;  %v2388_v59 = vld [vmem:[%s3485_s5 + $0x58] sm:$0xff]  ;;  %v2761_v60 = vpack.c.bf16 %v2383_v57, %v2382_v56  ;;  %v2390_v62 = vld [vmem:[%s3484_s4 + $0x60] sm:$0xff] }
  0x17   : > { %2751 = vmatprep.subr.bf16.mxu1 %v2975_v17  ;;  %v2767_v61 = vpack.c.bf16 %v2388_v59, %v2387_v58  ;;  %v2391_v63 = vld [vmem:[%s3484_s4 + $0x68] sm:$0xff]  ;;  %v999_v12 = vld [vmem:[%s3483_s3] sm:$0xff]  ;;  %v1001_v18 = vld [vmem:[%s3483_s3 + $0x10] sm:$0xff]  ;;  %s2978_s30 = smov [#allocation4]  }
  0x18   : > { %s2367_s20 = sshll.u32 %s312_s19, 3  ;;  %v1000_v13 = vld [vmem:[%s3483_s3 + $0x8] sm:$0xff]  ;;  %v1002_v19 = vld [vmem:[%s3483_s3 + $0x18] sm:$0xff]  ;;  %v2404_v21 = vld [vmem:[%s3483_s3 + $0x20] sm:$0xff] }
  0x19   : > { %s314_s23 = scalar_lea.vmem %s3480_s0, %s2367_s20  ;;  %v2782_v15 = vpack.c.bf16 %v1000_v13, %v999_v12  ;;  %v2405_v22 = vld [vmem:[%s3483_s3 + $0x28] sm:$0xff]  ;;  %s308_s20 = sand.u32 1, %s2957_s28  }
  0x1a   : > { %v3084_v0 = vld [vmem:[%s314_s23] sm:$0xff]  ;;  %v2788_v23 = vpack.c.bf16 %v2405_v22, %v2404_v21  ;;  %s2366_s21 = sshll.u32 %s308_s20, 3  ;;  %s2277_s16 = scalar_lea.sflag [#allocation5], %s308_s20 }
  0x1b   : > { %v323_v1 = vsel %vm322_vm0, %v3084_v0, 0.0  ;;  %s310_s25 = scalar_lea.vmem [#allocation4], %s2366_s21  ;;  %s2899_s21 = sshll.u32 %s2978_s30, 4  ;;  %s2900_s21 = int_to_ptr.vmem [resolvable:$false] %s2899_s21 }
  0x1c   : > { %324 = vadd.xlane.f32.xlu0 %v323_v1  ;;  %s2291_s26 = sshll.u32 %s310_s25, 4  ;;  %s2901_s22 = scalar_lea.vmem %s2900_s21, 256  ;;  %s3434_s26 = int_to_ptr.vmem [resolvable:$true] %s2291_s26 }
  0x1d   : > { %s2895_s19 = scalar_lea.vmem %s3434_s26, 128  ;;  %p2902_p1 = scmp.lt.s32.totalorder %s3434_s26, %s2900_s21 }
  0x1e   : > { %p2896_p12 = scmp.ne.s32.totalorder %s3434_s26, %s2895_s19  ;;  %p2903_p2 = scmp.lt.s32.totalorder %s2901_s22, %s2895_s19 }
  0x20   : > { %972 = vadd.xlane.f32.xlu0 %v323_v1  ;;  %v2395_v1 = vld [vmem:[%s3485_s5 + $0x60] sm:$0xff]  ;;  %p2897_p13 = pnand %p2896_p12, %p3064_p4  ;;  %p2904_p3 = por %p2903_p2, %p2902_p1 }
  0x22   : > { %p2898_p0 = pneg %p2897_p13 }
  0x24   : > { %p2905_p5 = pnand %p2904_p3, %p2898_p0 }
  0xa9   : > { %v325_v2 = vpop.xlane.xlu0 %324 }
  0xaa   : > { %v327_v3 = vmul.f32 0.03125, %v325_v2  ;;  %v2396_v2 = vld [vmem:[%s3485_s5 + $0x68] sm:$0xff] }
  0xac   : > { %v328_v4 = vsub.f32 %v3084_v0, %v327_v3  ;;  %v2770_v3 = vpack.c.bf16 %v2391_v63, %v2390_v62 }
  0xad   : > { %v973_v5 = vpop.xlane.xlu0 %972 }
  0xae   : > { %v975_v6 = vmul.f32 0.03125, %v973_v5  ;;  %v329_v7 = vmul.f32 %v328_v4, %v328_v4  ;;  %v2392_v5 = vld [vmem:[%s3484_s4 + $0x70] sm:$0xff] }
  0xb0   : > { %v3090_v8 = vsub.f32 %v3084_v0, %v975_v6  ;;  %v330_v9 = vsel %vm322_vm0, %v329_v7, 0.0  ;;  %v2393_v6 = vld [vmem:[%s3484_s4 + $0x78] sm:$0xff]  ;;  %v2397_v7 = vld [vmem:[%s3485_s5 + $0x70] sm:$0xff] }
  0xb1   : > { %331 = vadd.xlane.f32.xlu1 %v330_v9  ;;  %v2398_v9 = vld [vmem:[%s3485_s5 + $0x78] sm:$0xff] }
  0xb2   : > { %v977_v10 = vmul.f32 %v3090_v8, %v3090_v8 }
  0xb4   : > { %v978_v11 = vsel %vm322_vm0, %v977_v10, 0.0  ;;  %v2773_v10 = vpack.c.bf16 %v2393_v6, %v2392_v5 }
  0xb5   : > { %979 = vadd.xlane.f32.xlu1 %v978_v11  ;;  %v2779_v11 = vpack.c.bf16 %v2398_v9, %v2397_v7 }
 0x13e   : > { %v332_v26 = vpop.xlane.xlu1 %331 }
 0x13f   : > { %v333_v27 = vmul.f32 0.03125, %v332_v26  ;;  %v2406_v26 = vld [vmem:[%s3483_s3 + $0x30] sm:$0xff] }
 0x141   : > { %v334_v28 = vadd.f32 1e-05, %v333_v27  ;;  %v2407_v27 = vld [vmem:[%s3483_s3 + $0x38] sm:$0xff] }
 0x142   : > { %v980_v42 = vpop.xlane.xlu1 %979 }
 0x143   : > { %2875 = vrsqrt.f32 %v334_v28  ;;  %v981_v46 = vmul.f32 0.03125, %v980_v42  ;;  %v2791_v28 = vpack.c.bf16 %v2407_v27, %v2406_v26  ;;  %v2416_v26 = vld [vmem:[%s3483_s3 + $0x40] sm:$0xff]  ;;  %v2417_v27 = vld [vmem:[%s3483_s3 + $0x48] sm:$0xff] }
 0x145   : > { %v982_v53 = vadd.f32 1e-05, %v981_v46 }
 0x147   : > { %2877 = vrsqrt.f32 %v982_v53 }
 0x14d   : > { %v2876_v29 = vpop.eup %2875 }
 0x14e   : > { %v336_v32 = vmul.f32 %v2876_v29, %v328_v4  ;;  %v2776_v4 = vpack.c.bf16 %v2396_v2, %v2395_v1 }
 0x150   : > { %v343_v37 = vmul.f32 %v3133_v30, %v336_v32 }
 0x151   : > { %v2878_v14 = vpop.eup %2877 }
 0x152   : > { %v3157_v41 = vadd.f32 %v3150_v36, %v343_v37  ;;  %v984_v16 = vmul.f32 %v2878_v14, %v3090_v8  ;;  %v2785_v8 = vpack.c.bf16 %v1002_v19, %v1001_v18  ;;  %v2412_v14 = vld [vmem:[%s3486_s6 + $0x10] sm:$0xff]  ;;  %v1241_v19 = vld [vmem:[%s3486_s6] sm:$0xff] }
 0x154   : > { %2542 = vmatmul.mubr.msk.f32.vlgmr.msra.gmra.mrb[0].mxu0 %vm322_vm0, %v3157_v41  ;;  %2553 = vmatmul.mubr.msk.f32.vlgmr.msra.gmra.mrb[0].mxu1 %vm322_vm0, %v3157_v41  ;;  %v991_v20 = vmul.f32 %v3133_v30, %v984_v16 }
 0x155   : > { %2747 = vmatpush3.bf16.msra.mxu0 %v2746_v38  ;;  %2753 = vmatpush3.bf16.msra.mxu1 %v2752_v39 }
 0x156   : > { %2748 = vmatprep.subr.bf16.mxu0 %v2975_v17  ;;  %2754 = vmatprep.subr.bf16.mxu1 %v2975_v17  ;;  %v3282_v24 = vadd.f32 %v3150_v36, %v991_v20 }
 0x157   : > { %2563 = vmatprep.mubr.msk.f32.mxu0 %vm2976_vm1, %v2977_v25  ;;  %2574 = vmatprep.mubr.msk.f32.mxu1 %vm2976_vm1, %v2977_v25 }
 0x159   : > { %2750 = vmatpush3.bf16.msra.mxu0 %v2749_v47  ;;  %2756 = vmatpush3.bf16.msra.mxu1 %v2755_v48 }
 0x15a   : > { %2757 = vmatprep.subr.bf16.mxu0 %v2975_v17  ;;  %2763 = vmatprep.subr.bf16.mxu1 %v2975_v17 }
 0x15c   : > { %2564 = vmatmul.mubr.msk.f32.vlgmr.msra.gmra.mrb[2].mxu0 %vm322_vm0, %v3157_v41  ;;  %2575 = vmatmul.mubr.msk.f32.vlgmr.msra.gmra.mrb[2].mxu1 %vm322_vm0, %v3157_v41 }
 0x15d   : > { %2759 = vmatpush3.bf16.msra.mxu0 %v2758_v54  ;;  %2765 = vmatpush3.bf16.msra.mxu1 %v2764_v55 }
 0x15e   : > { %2760 = vmatprep.subr.bf16.mxu0 %v2975_v17  ;;  %2766 = vmatprep.subr.bf16.mxu1 %v2975_v17 }
 0x15f   : > { %2585 = vmatprep.mubr.msk.f32.mxu0 %vm2976_vm1, %v2977_v25  ;;  %2596 = vmatprep.mubr.msk.f32.mxu1 %vm2976_vm1, %v2977_v25 }
 0x161   : > { %2762 = vmatpush3.bf16.msra.mxu0 %v2761_v60  ;;  %2768 = vmatpush3.bf16.msra.mxu1 %v2767_v61 }
 0x162   : > { %2769 = vmatprep.subr.bf16.mxu0 %v2975_v17  ;;  %2775 = vmatprep.subr.bf16.mxu1 %v2975_v17 }
 0x164   : > { %2586 = vmatmul.mubr.msk.f32.vlgmr.msra.gmra.mrb[4].mxu0 %vm322_vm0, %v3157_v41  ;;  %2597 = vmatmul.mubr.msk.f32.vlgmr.msra.gmra.mrb[4].mxu1 %vm322_vm0, %v3157_v41 }
 0x165   : > { %2771 = vmatpush3.bf16.msra.mxu0 %v2770_v3  ;;  %2777 = vmatpush3.bf16.msra.mxu1 %v2776_v4 }
 0x166   : > { %2772 = vmatprep.subr.bf16.mxu0 %v2975_v17  ;;  %2778 = vmatprep.subr.bf16.mxu1 %v2975_v17 }
 0x167   : > { %2607 = vmatprep.mubr.msk.f32.mxu0 %vm2976_vm1, %v2977_v25  ;;  %2618 = vmatprep.mubr.msk.f32.mxu1 %vm2976_vm1, %v2977_v25 }
 0x169   : > { %2774 = vmatpush3.bf16.msra.mxu0 %v2773_v10  ;;  %2780 = vmatpush3.bf16.msra.mxu1 %v2779_v11 }
 0x16a   : > { %2781 = vmatprep.subr.bf16.mxu0 %v2975_v17  ;;  %2632 = vmatprep.subr.mxu1 %v2977_v25 }
 0x16c   : > { %2608 = vmatmul.mubr.msk.f32.vlgmr.msra.gmra.mrb[6].mxu0 %vm322_vm0, %v3157_v41  ;;  %2619 = vmatmul.mubr.msk.f32.vlgmr.msra.gmra.mrb[6].mxu1 %vm322_vm0, %v3157_v41 }
 0x16d   : > { %2783 = vmatpush3.bf16.msra.mxu0 %v2782_v15  ;;  %2629 = vmatprep.mubr.msk.f32.mxu0 %vm2976_vm1, %v2977_v25  ;;  %v2413_v15 = vld [vmem:[%s3486_s6 + $0x18] sm:$0xff] }
 0x16e   : > { %2784 = vmatprep.subr.bf16.mxu0 %v2975_v17  ;;  %2634 = vmatprep.mubr.msk.f32.mxu1 %vm2976_vm1, %v2977_v25  ;;  %v2794_v16 = vpack.c.bf16 %v2413_v15, %v2412_v14 }
 0x171   : > { %2786 = vmatpush3.bf16.msra.mxu0 %v2785_v8  ;;  %v1242_v8 = vld [vmem:[%s3486_s6 + $0x8] sm:$0xff] }
 0x172   : > { %2787 = vmatprep.subr.bf16.mxu0 %v2975_v17  ;;  %v2797_v21 = vpack.c.bf16 %v1242_v8, %v1241_v19 }
 0x174   : > { %2630 = vmatmul.mubr.msk.f32.vlgmr.msra.gmra.mrb[8].mxu0 %vm322_vm0, %v3282_v24 }
 0x175   : > { %2789 = vmatpush3.bf16.msra.mxu0 %v2788_v23  ;;  %2650 = vmatprep.mubr.msk.f32.mxu0 %vm2976_vm1, %v2977_v25 }
 0x176   : > { %2790 = vmatprep.subr.bf16.mxu0 %v2975_v17 }
 0x179   : > { %2792 = vmatpush3.bf16.msra.mxu0 %v2791_v28  ;;  %v2800_v28 = vpack.c.bf16 %v2417_v27, %v2416_v26  ;;  %v2438_v27 = vld [vmem:[%s3487_s7] ss:$0 sm:$0xff] }
 0x17a   : > { %2793 = vmatprep.subr.bf16.mxu0 %v2975_v17 }
 0x17c   : > { %2651 = vmatmul.mubr.msk.f32.vlgmr.msra.gmra.mrb[10].mxu0 %vm322_vm0, %v3282_v24 }
 0x17d   : > { %2667 = vmatprep.mubr.msk.f32.mxu0 %vm2976_vm1, %v2977_v25  ;;  %2795 = vmatpush3.bf16.msra.mxu0 %v2794_v16 }
 0x17e   : > { %2799 = vmatprep.subr.bf16.mxu0 %v2975_v17 }
 0x227   : > { %v424_v29 = vpop.f32.mrb[0].mxu0  ;;  %v500_v30 = vpop.f32.mrb[0].mxu1 }
 0x228   : > { %429 = vst.msk [vmem:[#allocation2] sm:$0xff] %vm428_vm2, %v424_v29  ;;  %504 = vst.msk [vmem:[#allocation3] sm:$0xff] %vm428_vm2, %v500_v30  ;;  %v2543_v31 = vpop.f32.mrb[1].mxu0  ;;  %v2554_v32 = vpop.f32.mrb[1].mxu1  ;;  %v2418_v29 = vld [vmem:[%s3483_s3 + $0x50] sm:$0xff]  ;;  %v2419_v30 = vld [vmem:[%s3483_s3 + $0x58] sm:$0xff] }
 0x22f   : > { %v576_v33 = vpop.f32.mrb[2].mxu0  ;;  %v653_v34 = vpop.f32.mrb[2].mxu1  ;;  %v1076_v35 = vld [vmem:[#allocation2] sm:$0xff] }
 0x230   : > { %581 = vst.msk [vmem:[#allocation2 + $0x8] sm:$0xff] %vm428_vm2, %v576_v33  ;;  %658 = vst.msk [vmem:[#allocation3 + $0x8] sm:$0xff] %vm428_vm2, %v653_v34  ;;  %v2565_v36 = vpop.f32.mrb[3].mxu0  ;;  %v2576_v37 = vpop.f32.mrb[3].mxu1  ;;  %2633 = vmatpush3.xpose.msk.msra.mxu1 %vm428_vm2, %v1076_v35  ;;  %v1167_v48 = vld [vmem:[#allocation3] sm:$0xff]  ;;  %v2803_v33 = vpack.c.bf16 %v2419_v30, %v2418_v29 }
 0x231   : > { %2637 = vmatprep.subr.mxu1 %v2977_v25 }
 0x237   : > { %v730_v38 = vpop.f32.mrb[4].mxu0  ;;  %v807_v39 = vpop.f32.mrb[4].mxu1  ;;  %v1319_v63 = vld [vmem:[#allocation2 + $0x8] sm:$0xff] }
 0x238   : > { %735 = vst.msk [vmem:[#allocation2 + $0x10] sm:$0xff] %vm428_vm2, %v730_v38  ;;  %812 = vst.msk [vmem:[#allocation3 + $0x10] sm:$0xff] %vm428_vm2, %v807_v39  ;;  %v2587_v40 = vpop.f32.mrb[5].mxu0  ;;  %v2598_v41 = vpop.f32.mrb[5].mxu1  ;;  %v1409_v1 = vld [vmem:[#allocation3 + $0x8] sm:$0xff] }
 0x23f   : > { %v884_v42 = vpop.f32.mrb[6].mxu0  ;;  %v961_v43 = vpop.f32.mrb[6].mxu1  ;;  %v1708_v23 = vld [vmem:[#allocation2 + $0x10] sm:$0xff] }
 0x240   : > { %889 = vst.msk [vmem:[#allocation2 + $0x18] sm:$0xff] %vm428_vm2, %v884_v42  ;;  %966 = vst.msk [vmem:[#allocation3 + $0x18] sm:$0xff] %vm428_vm2, %v961_v43  ;;  %v2609_v44 = vpop.f32.mrb[7].mxu0  ;;  %v2620_v45 = vpop.f32.mrb[7].mxu1  ;;  %v1798_v41 = vld [vmem:[#allocation3 + $0x10] sm:$0xff] }
 0x247   : > { %v1072_v46 = vpop.f32.mrb[8].mxu0 }
 0x248   : > { %v2631_v47 = vpop.f32.mrb[9].mxu0  ;;  %2635 = vmatmul.mubr.msk.f32.vlgmr.msra.gmra.mrb[8].mxu1 %vm428_vm2, %v1072_v46 }
 0x249   : > { %2638 = vmatpush3.msra.mxu1 %v1167_v48  ;;  %2639 = vmatprep.mubr.msk.f32.mxu1 %vm2976_vm1, %v2977_v25 }
 0x24a   : > { %2653 = vmatprep.subr.mxu1 %v2977_v25 }
 0x24f   : > { %v1314_v49 = vpop.f32.mrb[10].mxu0 }
 0x250   : > { %v2652_v50 = vpop.f32.mrb[11].mxu0 }
 0x31b   : > { %v1150_v51 = vpop.f32.mrb[8].mxu1 }
 0x31c   : > { %v1154_v52 = vmul.f32 0.25, %v1150_v51  ;;  %v2636_v53 = vpop.f32.mrb[9].mxu1  ;;  %v2424_v51 = vld [vmem:[%s3486_s6 + $0x20] sm:$0xff] }
 0x31e   : > { %v1156_v54 = vsel %vm1155_vm3, %v1154_v52, -inf }
 0x31f   : > { %1157 = vmax.xlane.f32.xlu0 %v1156_v54 }
 0x3ac   : > { %v1158_v55 = vpop.xlane.xlu0 %1157 }
 0x3ad   : > { %v1159_v56 = vsub.f32 %v1154_v52, %v1158_v55  ;;  %v2425_v52 = vld [vmem:[%s3486_s6 + $0x28] sm:$0xff]  ;;  %v2427_v55 = vld [vmem:[%s3483_s3 + $0x60] sm:$0xff] }
 0x3ae   : > { %v2806_v53 = vpack.c.bf16 %v2425_v52, %v2424_v51 }
 0x3af   : > { %v1160_v57 = vmul.f32 1.442695, %v1159_v56  ;;  %v2428_v56 = vld [vmem:[%s3483_s3 + $0x68] sm:$0xff] }
 0x3b1   : > { %2879 = vpow2.f32 %v1160_v57 }
 0x3bb   : > { %v2880_v58 = vpop.eup %2879 }
 0x3bc   : > { %v1162_v59 = vsel %vm1155_vm3, %v2880_v58, 0.0 }
 0x3bd   : > { %1163 = vadd.xlane.f32.xlu1 %v1162_v59 }
 0x44a   : > { %v1164_v60 = vpop.xlane.xlu1 %1163 }
 0x44b   : > { %2881 = vrcp.f32 %v1164_v60  ;;  %v2429_v60 = vld [vmem:[%s3483_s3 + $0x70] sm:$0xff] }
 0x455   : > { %v2882_v61 = vpop.eup %2881 }
 0x456   : > { %v1166_v62 = vmul.f32 %v2882_v61, %v2880_v58  ;;  %v2809_v58 = vpack.c.bf16 %v2428_v56, %v2427_v55  ;;  %v2430_v61 = vld [vmem:[%s3483_s3 + $0x78] sm:$0xff] }
 0x458   : > { %2640 = vmatmul.mubr.msk.f32.vlgmr.msra.gmra.mrb[10].mxu1 %vm1155_vm3, %v1166_v62  ;;  %v2812_v62 = vpack.c.bf16 %v2430_v61, %v2429_v60 }
 0x459   : > { %2654 = vmatpush3.xpose.msk.msra.mxu1 %vm428_vm2, %v1319_v63  ;;  %2655 = vmatprep.mubr.msk.f32.mxu1 %vm2976_vm1, %v2977_v25 }
 0x45a   : > { %2658 = vmatprep.subr.mxu1 %v2977_v25 }
 0x45c   : > { %2656 = vmatmul.mubr.msk.f32.vlgmr.msra.gmra.mrb[12].mxu1 %vm428_vm2, %v1314_v49 }
 0x45d   : > { %2659 = vmatpush3.msra.mxu1 %v1409_v1  ;;  %2660 = vmatprep.mubr.msk.f32.mxu1 %vm2976_vm1, %v2977_v25 }
 0x45e   : > { %2796 = vmatprep.subr.bf16.mxu1 %v2975_v17 }
 0x52b   : > { %v1237_v2 = vpop.f32.mrb[10].mxu1 }
 0x52c   : > { %v2641_v3 = vpop.f32.mrb[11].mxu1 }
 0x52f   : > { %v1392_v4 = vpop.f32.mrb[12].mxu1 }
 0x530   : > { %v1396_v5 = vmul.f32 0.25, %v1392_v4  ;;  %v2657_v6 = vpop.f32.mrb[13].mxu1 }
 0x532   : > { %v1397_v7 = vsel %vm1155_vm3, %v1396_v5, -inf }
 0x533   : > { %1398 = vmax.xlane.f32.xlu0 %v1397_v7 }
 0x5c0   : > { %v1399_v9 = vpop.xlane.xlu0 %1398 }
 0x5c1   : > { %v1400_v10 = vsub.f32 %v1396_v5, %v1399_v9 }
 0x5c3   : > { %v1401_v11 = vmul.f32 1.442695, %v1400_v10 }
 0x5c5   : > { %2883 = vpow2.f32 %v1401_v11 }
 0x5cf   : > { %v2884_v12 = vpop.eup %2883 }
 0x5d0   : > { %v1403_v13 = vsel %vm1155_vm3, %v2884_v12, 0.0 }
 0x5d1   : > { %1404 = vadd.xlane.f32.xlu1 %v1403_v13 }
 0x65e   : > { %v1405_v18 = vpop.xlane.xlu1 %1404 }
 0x65f   : > { %2885 = vrcp.f32 %v1405_v18  ;;  %v2436_v18 = vld [vmem:[%s3486_s6 + $0x38] sm:$0xff] }
 0x669   : > { %v2886_v20 = vpop.eup %2885 }
 0x66a   : > { %v1407_v22 = vmul.f32 %v2886_v20, %v2884_v12 }
 0x66c   : > { %2661 = vmatmul.mubr.msk.f32.vlgmr.msra.gmra.mrb[14].mxu1 %vm1155_vm3, %v1407_v22 }
 0x66d   : > { %2798 = vmatpush3.bf16.msra.mxu1 %v2797_v21  ;;  %2674 = vmatprep.mubr.msk.f32.mxu1 %vm2976_vm1, %v2977_v25 }
 0x66e   : > { %2688 = vmatprep.subr.mxu1 %v2977_v25 }
 0x670   : > { %2675 = vmatmul.mubr.msk.f32.vlgmr.msra.gmra.mrb[16].mxu1 %vm428_vm2, %v1237_v2  ;;  %v2025_v2 = vld [vmem:[#allocation2 + $0x18] sm:$0xff] }
 0x671   : > { %2690 = vmatprep.mubr.msk.f32.mxu1 %vm2976_vm1, %v2977_v25 }
 0x676   : > { %2689 = vmatpush3.xpose.msk.msra.mxu1 %vm428_vm2, %v1708_v23 }
 0x677   : > { %2693 = vmatprep.subr.mxu1 %v2977_v25 }
 0x73f   : > { %v1479_v31 = vpop.f32.mrb[14].mxu1 }
 0x740   : > { %v2662_v32 = vpop.f32.mrb[15].mxu1  ;;  %2668 = vmatmul.mubr.msk.f32.vlgmr.msra.gmra.mrb[12].mxu0 %vm428_vm2, %v1479_v31 }
 0x741   : > { %2801 = vmatpush3.bf16.msra.mxu0 %v2800_v28  ;;  %2685 = vmatprep.mubr.msk.f32.mxu0 %vm2976_vm1, %v2977_v25 }
 0x742   : > { %2802 = vmatprep.subr.bf16.mxu0 %v2975_v17 }
 0x743   : > { %v1628_v34 = vpop.f32.mrb[16].mxu1 }
 0x744   : > { %v2676_v35 = vpop.f32.mrb[17].mxu1 }
 0x745   : > { %2804 = vmatpush3.bf16.msra.mxu0 %v2803_v33 }
 0x746   : > { %2805 = vmatprep.subr.bf16.mxu0 %v2975_v17 }
 0x748   : > { %2686 = vmatmul.mubr.msk.f32.vlgmr.msra.gmra.mrb[14].mxu0 %vm322_vm0, %v3282_v24 }
 0x749   : > { %2702 = vmatprep.mubr.msk.f32.mxu0 %vm2976_vm1, %v2977_v25  ;;  %2807 = vmatpush3.bf16.msra.mxu0 %v2806_v53 }
 0x74a   : > { %2716 = vmatprep.subr.mxu0 %v2977_v25 }
 0x813   : > { %v1555_v36 = vpop.f32.mrb[12].mxu0 }
 0x814   : > { %v1629_v37 = vadd.f32 %v1628_v34, %v1555_v36  ;;  %v2669_v38 = vpop.f32.mrb[13].mxu0 }
 0x81b   : > { %v1703_v39 = vpop.f32.mrb[14].mxu0 }
 0x81c   : > { %v2687_v40 = vpop.f32.mrb[15].mxu0  ;;  %2691 = vmatmul.mubr.msk.f32.vlgmr.msra.gmra.mrb[18].mxu1 %vm428_vm2, %v1703_v39 }
 0x81d   : > { %2694 = vmatpush3.msra.mxu1 %v1798_v41  ;;  %2695 = vmatprep.mubr.msk.f32.mxu1 %vm2976_vm1, %v2977_v25 }
 0x81e   : > { %2808 = vmatprep.subr.bf16.mxu1 %v2975_v17 }
 0x8ef   : > { %v1781_v42 = vpop.f32.mrb[18].mxu1 }
 0x8f0   : > { %v1785_v43 = vmul.f32 0.25, %v1781_v42  ;;  %v2692_v44 = vpop.f32.mrb[19].mxu1 }
 0x8f2   : > { %v1786_v45 = vsel %vm1155_vm3, %v1785_v43, -inf }
 0x8f3   : > { %1787 = vmax.xlane.f32.xlu0 %v1786_v45 }
 0x980   : > { %v1788_v46 = vpop.xlane.xlu0 %1787 }
 0x981   : > { %v1789_v47 = vsub.f32 %v1785_v43, %v1788_v46 }
 0x983   : > { %v1790_v48 = vmul.f32 1.442695, %v1789_v47 }
 0x985   : > { %2887 = vpow2.f32 %v1790_v48 }
 0x98f   : > { %v2888_v49 = vpop.eup %2887 }
 0x990   : > { %v1792_v50 = vsel %vm1155_vm3, %v2888_v49, 0.0 }
 0x991   : > { %1793 = vadd.xlane.f32.xlu1 %v1792_v50 }
 0xa1e   : > { %v1794_v54 = vpop.xlane.xlu1 %1793 }
 0xa1f   : > { %2889 = vrcp.f32 %v1794_v54 }
 0xa29   : > { %v2890_v57 = vpop.eup %2889 }
 0xa2a   : > { %v1796_v59 = vmul.f32 %v2890_v57, %v2888_v49 }
 0xa2c   : > { %2696 = vmatmul.mubr.msk.f32.vlgmr.msra.gmra.mrb[20].mxu1 %vm1155_vm3, %v1796_v59 }
 0xa2d   : > { %2810 = vmatpush3.bf16.msra.mxu1 %v2809_v58  ;;  %2713 = vmatprep.mubr.msk.f32.mxu1 %vm2976_vm1, %v2977_v25 }
 0xa2e   : > { %2811 = vmatprep.subr.bf16.mxu1 %v2975_v17 }
 0xa31   : > { %2813 = vmatpush3.bf16.msra.mxu1 %v2812_v62 }
 0xa32   : > { %2814 = vmatprep.subr.bf16.mxu1 %v2975_v17 }
 0xa34   : > { %2714 = vmatmul.mubr.msk.f32.vlgmr.msra.gmra.mrb[22].mxu1 %vm322_vm0, %v3282_v24  ;;  %v2115_v24 = vld [vmem:[#allocation3 + $0x18] sm:$0xff] }
 0xa35   : > { %2730 = vmatprep.mubr.msk.f32.mxu1 %vm2976_vm1, %v2977_v25 }
 0xaff   : > { %v1868_v63 = vpop.f32.mrb[20].mxu1 }
 0xb00   : > { %v2697_v1 = vpop.f32.mrb[21].mxu1  ;;  %2703 = vmatmul.mubr.msk.f32.vlgmr.msra.gmra.mrb[16].mxu0 %vm428_vm2, %v1868_v63 }
 0xb01   : > { %2717 = vmatpush3.xpose.msk.msra.mxu0 %vm428_vm2, %v2025_v2  ;;  %2718 = vmatprep.mubr.msk.f32.mxu0 %vm2976_vm1, %v2977_v25 }
 0xb02   : > { %2721 = vmatprep.subr.mxu0 %v2977_v25 }
 0xb07   : > { %v2020_v3 = vpop.f32.mrb[22].mxu1 }
 0xb08   : > { %v2715_v17 = vpop.f32.mrb[23].mxu1  ;;  %2719 = vmatmul.mubr.msk.f32.vlgmr.msra.gmra.mrb[18].mxu0 %vm428_vm2, %v2020_v3 }
 0xb09   : > { %2722 = vmatpush3.msra.mxu0 %v2115_v24  ;;  %2723 = vmatprep.mubr.msk.f32.mxu0 %vm2976_vm1, %v2977_v25  ;;  %v2435_v25 = vld [vmem:[%s3486_s6 + $0x30] sm:$0xff] }
 0xb0a   : > { %v2815_v19 = vpack.c.bf16 %v2436_v18, %v2435_v25 }
 0xb0c   : > { %2816 = vmatpush3.bf16.msra.mxu1 %v2815_v19 }
 0xbd3   : > { %v1944_v4 = vpop.f32.mrb[16].mxu0 }
 0xbd4   : > { %v1948_v5 = vadd.f32 %v1944_v4, %v1629_v37  ;;  %v2704_v6 = vpop.f32.mrb[17].mxu0 }
 0xbdb   : > { %v2098_v7 = vpop.f32.mrb[18].mxu0 }
 0xbdc   : > { %v2102_v9 = vmul.f32 0.25, %v2098_v7  ;;  %v2720_v10 = vpop.f32.mrb[19].mxu0 }
 0xbde   : > { %v2103_v11 = vsel %vm1155_vm3, %v2102_v9, -inf }
 0xbdf   : > { %2104 = vmax.xlane.f32.xlu0 %v2103_v11 }
 0xc6c   : > { %v2105_v12 = vpop.xlane.xlu0 %2104 }
 0xc6d   : > { %v2106_v13 = vsub.f32 %v2102_v9, %v2105_v12 }
 0xc6f   : > { %v2107_v14 = vmul.f32 1.442695, %v2106_v13 }
 0xc71   : > { %2891 = vpow2.f32 %v2107_v14 }
 0xc7b   : > { %v2892_v15 = vpop.eup %2891 }
 0xc7c   : > { %v2109_v16 = vsel %vm1155_vm3, %v2892_v15, 0.0 }
 0xc7d   : > { %2110 = vadd.xlane.f32.xlu1 %v2109_v16 }
 0xd0a   : > { %v2111_v8 = vpop.xlane.xlu1 %2110 }
 0xd0b   : > { %2893 = vrcp.f32 %v2111_v8 }
 0xd15   : > { %v2894_v20 = vpop.eup %2893 }
 0xd16   : > { %v2113_v21 = vmul.f32 %v2894_v20, %v2892_v15 }
 0xd18   : > { %2724 = vmatmul.mubr.msk.f32.vlgmr.msra.gmra.mrb[20].mxu0 %vm1155_vm3, %v2113_v21 }
 0xdeb   : > { %v2185_v22 = vpop.f32.mrb[20].mxu0 }
 0xdec   : > { %v2725_v23 = vpop.f32.mrb[21].mxu0  ;;  %2731 = vmatmul.mubr.msk.f32.vlgmr.msra.gmra.mrb[24].mxu1 %vm428_vm2, %v2185_v22 }
 0xebf   : > { %v2261_v26 = vpop.f32.mrb[24].mxu1 }
 0xec0   : > { %v2265_v28 = vadd.f32 %v2261_v26, %v1948_v5  ;;  %v2732_v29 = vpop.f32.mrb[25].mxu1 }
 0xec2   : > { %v2273_v30 = vadd.f32 %v2438_v27, %v2265_v28 }
 0xec4   : > { %v2274_v31 = vadd.f32 %v2273_v30, %v3084_v0 }
 0xec6   : > { %2275 = vst.msk [vmem:[%s310_s25] sm:$0xff] %vm322_vm0, %v2274_v31 }
 0xec7   : > { %2908 = shalt.err (!%p2905_p5)
}
 0xec8   : > { %s2909_s20 = scalar_lea.hbm %s3432_s14, 128  ;;  %s2913_s25 = scalar_lea.hbm %s3488_s8, 256 }
 0xec9   : > { %p2910_p6 = scmp.ne.s32.totalorder %s3432_s14, %s2909_s20  ;;  %p2914_p10 = scmp.lt.u32.totalorder %s3432_s14, %s3488_s8 }
 0xeca   : > { %p2915_p11 = scmp.lt.u32.totalorder %s2913_s25, %s2909_s20  ;;  %p2917_p13 = scmp.lt.u32.totalorder %s2909_s20, %s3432_s14 }
 0xecb   : > { %p2911_p7 = pnand %p2910_p6, %p3064_p4 }
 0xecc   : > { %p2916_p12 = por %p2915_p11, %p2914_p10 }
 0xecd   : > { %p2912_p9 = pneg %p2911_p7 }
 0xece   : > { %p2918_p0 = por %p2917_p13, %p2916_p12 }
 0xed0   : > { %p2919_p1 = pnand %p2918_p0, %p2912_p9 }
 0xed2   : > { %2922 = shalt.err (!%p2919_p1)
}
 0xed3   : > { %2817 = dma.vmem_to_hbm [thread:$0]  (%p3064_p4), %s3434_s26, 128, %s3432_s14, %s2277_s16  }
 0xed4 PF: > { %p2823_p2 = scmp.ge.s32.totalorder %s2973_s10, 2  ;;  %s2303_s19 = sand.u32 1, %s2953_s27  }
 0xed5   : > { %s2304_s30 = scalar_lea.sflag [#allocation5], %s2303_s19 }
 0xed6   : > { %p2820_p3 = pnand %p2823_p2, %p3071_p8 }
 0xed8   : > { %2948 = dma.done.wait (!%p2820_p3), %s2304_s30, 128  }
 0xed9   : > { %2950 = vsyncadd (!%p2820_p3), %s2304_s30, 4294967168  ;;  %s21_s10 = sadd.s32 1, %s2973_s10   ;;  %s3491_s27 = smov %s2957_s28 }
 0xeda   : > { %p18_p5 = scmp.ge.s32.totalorder %s21_s10, 4   ;;  %s3492_s28 = smov %s2961_s29 }
 0xedb   : > { %s3493_s29 = smov %s3077_s18  ;;  %s3494_s30 = smov %s2969_s9 }
 0xedc   : > { %s3495_s9 = smov %s3497_s13  ;;  %20 = sbr.rel (!%p18_p5) target bundleno = 4 (0x4), region = 116 }
 0xee3   :  { %2309 = vsyncpa [#allocation5], 1 }
 0xee4   :  { %2311 = vsyncpa [#allocation5 + $0x1], 1 }

</bundles_post_ra>
